<compile_context>
chip_gen: v7x
topology: tpu7x:2x2x1
jax: 0.10.0
libtpu: 0.0.40
codegen_flags: <defaults>
</compile_context>

<pallas_src>
import math

import jax
import jax.numpy as jnp
from jax import lax
from jax.experimental import pallas as pl
from jax.experimental.pallas import tpu as pltpu


def _round_up(x, m):
    return (x + m - 1) // m * m


# ----------------------------------------------------------------------------
# Pallas kernels
# ----------------------------------------------------------------------------
def matmul_bias_kernel(x_ref, w_ref, b_ref, o_ref, acc_ref):
    """Tiled o = x @ w + b with f32 accumulation (k = reduction axis, last in grid)."""
    k = pl.program_id(2)

    @pl.when(k == 0)
    def _():
        acc_ref[...] = jnp.zeros_like(acc_ref)

    acc_ref[...] += jnp.dot(x_ref[...], w_ref[...],
                            preferred_element_type=jnp.float32)

    @pl.when(k == pl.num_programs(2) - 1)
    def _():
        o_ref[...] = (acc_ref[...] + b_ref[...]).astype(o_ref.dtype)


def lstm_rec_kernel(gx_ref, whh_ref, len_ref, out_ref, h_ref, c_ref):
    """One grid step = Tc timesteps of the LSTM recurrence (sequential grid).

    gx_ref : (Tc, B, 4H) f32  precomputed x@W_ih + (b_ih + b_hh) for this time chunk
    whh_ref: (H, 4H)     bf16 recurrent weights (resident)
    len_ref: (B, 1)      i32  sequence lengths (resident)
    out_ref: (Tc, B, H)  f32  per-timestep hidden output (zero on padded steps)
    h_ref  : (B, H)      f32  running hidden state (resident accumulator output)
    c_ref  : (B, H)      f32  running cell state   (resident accumulator output)
    """
    tc = pl.program_id(0)
    Tc = gx_ref.shape[0]
    H = h_ref.shape[-1]

    @pl.when(tc == 0)
    def _():
        # init_hidden(): zeros for (h, c)
        h_ref[...] = jnp.zeros_like(h_ref)
        c_ref[...] = jnp.zeros_like(c_ref)

    whh = whh_ref[...]                       # (H, 4H) bf16, resident
    lens = len_ref[...]                      # (B, 1) int32, resident
    t0 = tc * Tc

    def step(i, carry):
        h_prev, c_prev = carry               # (B, H) f32 each, kept in vregs
        gates = gx_ref[i] + jnp.dot(h_prev.astype(jnp.bfloat16), whh,
                                    preferred_element_type=jnp.float32)
        # PyTorch gate order i, f, g, o; H is a multiple of 128 -> lane-aligned slices.
        i_g = jax.nn.sigmoid(gates[:, 0 * H:1 * H])
        f_g = jax.nn.sigmoid(gates[:, 1 * H:2 * H])
        g_g = jnp.tanh(gates[:, 2 * H:3 * H])
        o_g = jax.nn.sigmoid(gates[:, 3 * H:4 * H])
        c_new = f_g * c_prev + i_g * g_g
        h_new = o_g * jnp.tanh(c_new)
        # Packed-sequence semantics: state only advances while t < length; padded
        # output positions are zero (pad_packed_sequence).
        valid = (lens > (t0 + i)).astype(jnp.float32)         # (B, 1)
        out_ref[pl.ds(i, 1)] = (valid * h_new)[None]
        return (valid * h_new + (1.0 - valid) * h_prev,
                valid * c_new + (1.0 - valid) * c_prev)

    h_fin, c_fin = lax.fori_loop(0, Tc, step, (h_ref[...], c_ref[...]),
                                 unroll=True)
    h_ref[...] = h_fin
    c_ref[...] = c_fin


# ----------------------------------------------------------------------------
# Wrappers
# ----------------------------------------------------------------------------
def run_matmul_bias(x, w, b_row, *, tm=256, tn=512, tk=512):
    """(M,K) @ (K,N) + (1,N) -> (M,N) f32.  bf16 MXU inputs, f32 accumulation, tiled grid."""
    M, K = x.shape
    K2, N = w.shape
    assert K == K2
    Mp, Kp, Np = _round_up(M, 8), _round_up(K, 128), _round_up(N, 128)
    tm, tk, tn = min(tm, Mp), min(tk, Kp), min(tn, Np)
    Mp, Kp, Np = _round_up(Mp, tm), _round_up(Kp, tk), _round_up(Np, tn)

    xp = jnp.pad(x, ((0, Mp - M), (0, Kp - K))).astype(jnp.bfloat16)
    wp = jnp.pad(w, ((0, Kp - K), (0, Np - N))).astype(jnp.bfloat16)
    bp = jnp.pad(b_row.astype(jnp.float32), ((0, 0), (0, Np - N)))

    out = pl.pallas_call(
        matmul_bias_kernel,
        out_shape=jax.ShapeDtypeStruct((Mp, Np), jnp.float32),
        grid_spec=pltpu.PrefetchScalarGridSpec(
            num_scalar_prefetch=0,
            grid=(Mp // tm, Np // tn, Kp // tk),
            in_specs=[
                pl.BlockSpec((tm, tk), lambda i, j, k: (i, k)),
                pl.BlockSpec((tk, tn), lambda i, j, k: (k, j)),
                pl.BlockSpec((1, tn), lambda i, j, k: (0, j)),
            ],
            out_specs=pl.BlockSpec((tm, tn), lambda i, j, k: (i, j)),
            scratch_shapes=[pltpu.VMEM((tm, tn), jnp.float32)],
        ),
        compiler_params=pltpu.CompilerParams(
            dimension_semantics=("parallel", "parallel", "arbitrary")),
    )(xp, wp, bp)
    return out[:M, :N]


def run_lstm_rec(gates_x, w_hh_bf16, lengths_b1, Tc):
    """gates_x: (T_pad, B_pad, 4H_pad) f32; w_hh: (H_pad, 4H_pad) bf16; lengths: (B_pad,1) i32."""
    T_pad, B_pad, G = gates_x.shape
    H_pad = w_hh_bf16.shape[0]
    n_chunks = T_pad // Tc

    out_shapes = (
        jax.ShapeDtypeStruct((T_pad, B_pad, H_pad), jnp.float32),  # hidden sequence
        jax.ShapeDtypeStruct((B_pad, H_pad), jnp.float32),         # last valid h
        jax.ShapeDtypeStruct((B_pad, H_pad), jnp.float32),         # last valid c
    )

    grid_spec = pltpu.PrefetchScalarGridSpec(
        num_scalar_prefetch=0,
        grid=(n_chunks,),
        in_specs=[
            pl.BlockSpec((Tc, B_pad, G), lambda c: (c, 0, 0)),     # gates_x chunk
            pl.BlockSpec((H_pad, G), lambda c: (0, 0)),            # W_hh (resident)
            pl.BlockSpec((B_pad, 1), lambda c: (0, 0)),            # lengths (resident)
        ],
        out_specs=[
            pl.BlockSpec((Tc, B_pad, H_pad), lambda c: (c, 0, 0)),  # out chunk
            pl.BlockSpec((B_pad, H_pad), lambda c: (0, 0)),         # h state / output
            pl.BlockSpec((B_pad, H_pad), lambda c: (0, 0)),         # c state / output
        ],
    )

    return pl.pallas_call(
        lstm_rec_kernel,
        out_shape=out_shapes,
        grid_spec=grid_spec,
        compiler_params=pltpu.CompilerParams(
            dimension_semantics=("arbitrary",)),                   # recurrence -> sequential
    )(gates_x, w_hh_bf16, lengths_b1)


def _pad_gate_cols(w, H, H_pad):
    """Pad an (in, 4H) gate-blocked matrix to (in, 4*H_pad), zero-padding per gate block."""
    in_dim = w.shape[0]
    w4 = w.reshape(in_dim, 4, H)
    w4 = jnp.pad(w4, ((0, 0), (0, 0), (0, H_pad - H)))
    return w4.reshape(in_dim, 4 * H_pad)


def lstm_module_forward(params, input_ids, attention_mask):
    """Mirrors LSTM.forward: returns {'logits': (B, T, V), 'hidden': (h, c)},
    h/c of shape (num_layers=1, B, H).  attention_mask must be a contiguous prefix."""
    B, T = input_ids.shape
    E = params["embedding"].shape[1]
    H = params["w_hh"].shape[0]
    V = params["w_fc"].shape[1]

    # Lane/sublane-aligned padded sizes (exact zero-padding, see kernel header comment).
    B_pad = _round_up(B, 8)
    H_pad = _round_up(H, 128)
    E_pad = _round_up(E, 128)
    Tc = min(_round_up(T, 8), 32)           # timesteps per grid step
    T_pad = _round_up(T, Tc)

    # ---- pad parameters (in a training loop you would do this once, not per call) ----
    emb_tab = jnp.pad(params["embedding"].astype(jnp.float32), ((0, 0), (0, E_pad - E)))
    w_ih = jnp.pad(_pad_gate_cols(params["w_ih"], H, H_pad), ((0, E_pad - E), (0, 0)))
    w_hh = jnp.pad(_pad_gate_cols(params["w_hh"], H, H_pad),
                   ((0, H_pad - H), (0, 0))).astype(jnp.bfloat16)
    b_lstm = _pad_gate_cols(params["b_lstm"], H, H_pad)            # (1, 4*H_pad)
    w_fc = jnp.pad(params["w_fc"], ((0, H_pad - H), (0, 0)))       # (H_pad, V)
    b_fc = params["b_fc"]                                          # (1, V)

    # ---- embedding lookup emitted directly in time-major (no big activation transpose) ----
    ids_tb = jnp.pad(input_ids, ((0, B_pad - B), (0, T_pad - T))).T      # (T_pad, B_pad)
    x_tbe = emb_tab[ids_tb]                                              # (T_pad, B_pad, E_pad)

    lengths = jnp.sum(attention_mask.astype(jnp.int32), axis=1)          # (B,)
    lengths = jnp.pad(lengths, (0, B_pad - B)).reshape(B_pad, 1)         # (B_pad, 1)

    # ---- hoisted input projection: one big MXU matmul over all tokens ----
    gx = run_matmul_bias(x_tbe.reshape(T_pad * B_pad, E_pad), w_ih, b_lstm)
    gx = gx.reshape(T_pad, B_pad, 4 * H_pad)

    # ---- sequential recurrence (only h @ W_hh per timestep) ----
    out_tbh, h_last, c_last = run_lstm_rec(gx, w_hh, lengths, Tc)

    # ---- logits = fc(output) ----
    # One transpose of the (T,B,H) activation (narrower than the V-wide logits) so the
    # final matmul directly yields batch-major logits.
    out_bth = jnp.transpose(out_tbh, (1, 0, 2))                          # (B_pad, T_pad, H_pad)
    logits = run_matmul_bias(out_bth.reshape(B_pad * T_pad, H_pad), w_fc, b_fc)
    logits = logits.reshape(B_pad, T_pad, V)[:B, :T]

    hidden = (h_last[:B, :H][None], c_last[:B, :H][None])               # (num_layers=1, B, H)
    return {"logits": logits, "hidden": hidden}


# ----------------------------------------------------------------------------
# Pure-JAX f32 reference (same semantics), for a correctness sanity check
# ----------------------------------------------------------------------------
def reference_forward(params, input_ids, attention_mask):
    emb = params["embedding"][input_ids].astype(jnp.float32)             # (B, T, E)
    w_ih, w_hh, b = params["w_ih"], params["w_hh"], params["b_lstm"]
    H = w_hh.shape[0]
    B = emb.shape[0]
    mask = attention_mask.astype(jnp.float32)                            # (B, T)

    def step(carry, xs):
        h, c = carry
        x_t, m_t = xs                                                    # (B,E), (B,1)
        gates = x_t @ w_ih + h @ w_hh + b
        i_g = jax.nn.sigmoid(gates[:, 0 * H:1 * H])
        f_g = jax.nn.sigmoid(gates[:, 1 * H:2 * H])
        g_g = jnp.tanh(gates[:, 2 * H:3 * H])
        o_g = jax.nn.sigmoid(gates[:, 3 * H:4 * H])
        c_new = f_g * c + i_g * g_g
        h_new = o_g * jnp.tanh(c_new)
        h = m_t * h_new + (1.0 - m_t) * h
        c = m_t * c_new + (1.0 - m_t) * c
        return (h, c), m_t * h_new

    xs = (jnp.transpose(emb, (1, 0, 2)), jnp.transpose(mask)[:, :, None])
    (h, c), outs = lax.scan(step, (jnp.zeros((B, H)), jnp.zeros((B, H))), xs)
    out_bth = jnp.transpose(outs, (1, 0, 2))
    logits = out_bth @ params["w_fc"] + params["b_fc"]
    return {"logits": logits, "hidden": (h[None], c[None])}


# ----------------------------------------------------------------------------
# Deterministic parameter init (matches nn.Module shapes; num_layers=1)
# ----------------------------------------------------------------------------
def init_params(key, vocab_size, embedding_dim, hidden_dim, num_labels=3):
    ks = jax.random.split(key, 8)
    k = 1.0 / math.sqrt(hidden_dim)
    u = lambda kk, shape: jax.random.uniform(kk, shape, jnp.float32, -k, k)

    b_ih = u(ks[3], (4 * hidden_dim,))
    b_hh = u(ks[4], (4 * hidden_dim,))
    params = {
        # nn.Embedding(vocab_size, embedding_dim): N(0, 1)
        "embedding": jax.random.normal(ks[0], (vocab_size, embedding_dim), jnp.float32),
        # nn.LSTM weights stored transposed: [in, 4H], PyTorch gate order i,f,g,o
        "w_ih": u(ks[1], (embedding_dim, 4 * hidden_dim)),
        "w_hh": u(ks[2], (hidden_dim, 4 * hidden_dim)),
        "b_lstm": (b_ih + b_hh)[None, :],                      # (1, 4H)
        # nn.Linear(hidden_dim, vocab_size), stored as [H, V]
        "w_fc": u(ks[5], (hidden_dim, vocab_size)),
        "b_fc": u(ks[6], (vocab_size,))[None, :],              # (1, V)
        # nn.Linear(hidden_dim, num_labels) -- used only by forward_classification
        "w_fc_cls": u(ks[7], (hidden_dim, num_labels)),
        "b_fc_cls": jnp.zeros((1, num_labels), jnp.float32),
    }
    return params


# ----------------------------------------------------------------------------
if __name__ == "__main__":
    VOCAB = 32
    EMB = 16
    HID = 32
    B, T = 2, 8
    NUM_LAYERS = 1
    # TODO(synk): multi-layer LSTM with inter-layer dropout not implemented (num_layers=1 here).

    key = jax.random.PRNGKey(0)
    pkey, ikey = jax.random.split(key)
    params = init_params(pkey, VOCAB, EMB, HID)

    input_ids = jax.random.randint(ikey, (B, T), 0, VOCAB, dtype=jnp.int32)
    # lengths = [8, 5]; max length == T so pad_packed_sequence output spans the full T
    lengths = jnp.array([T, 5], dtype=jnp.int32)
    attention_mask = (jnp.arange(T)[None, :] < lengths[:, None]).astype(jnp.int32)

    out = jax.jit(lstm_module_forward)(params, input_ids, attention_mask)
    jax.block_until_ready(out)

    assert out["logits"].shape == (B, T, VOCAB)
    assert out["hidden"][0].shape == (NUM_LAYERS, B, HID)
    assert out["hidden"][1].shape == (NUM_LAYERS, B, HID)

    # Numerical sanity check vs pure-JAX f32 reference (kernels use bf16 MXU inputs,
    # so allow a small absolute tolerance).
    ref = reference_forward(params, input_ids, attention_mask)
    err_logits = float(jnp.max(jnp.abs(out["logits"] - ref["logits"])))
    err_h = float(jnp.max(jnp.abs(out["hidden"][0] - ref["hidden"][0])))
    err_c = float(jnp.max(jnp.abs(out["hidden"][1] - ref["hidden"][1])))
    assert err_logits < 1e-1 and err_h < 1e-1 and err_c < 1e-1, (err_logits, err_h, err_c)

    print("KERNEL_OK")
</pallas_src>

<mosaic_0001>
module attributes {stable_mosaic.version = 11 : i64} {
  func.func @matmul_bias_kernel(%arg0: i32, %arg1: i32, %arg2: i32, %arg3: memref<64x128xbf16, #tpu.memory_space<vmem>>, %arg4: memref<128x512xbf16, #tpu.memory_space<vmem>>, %arg5: memref<1x512xf32, #tpu.memory_space<vmem>>, %arg6: memref<64x512xf32, #tpu.memory_space<vmem>>, %arg7: memref<64x512xf32, #tpu.memory_space<vmem>>) attributes {dimension_semantics = [#tpu.dimension_semantics<parallel>, #tpu.dimension_semantics<parallel>, #tpu.dimension_semantics<arbitrary>], iteration_bounds = array<i64: 1, 1, 1>, scalar_prefetch = 0 : i64, scratch_operands = 1 : i64, tpu.core_type = #tpu.core_type<tc>, window_params = [{transform_indices = @transform_0, window_bounds = array<i64: 64, 128>}, {transform_indices = @transform_1, window_bounds = array<i64: 128, 512>}, {transform_indices = @transform_2, window_bounds = array<i64: 1, 512>}, {transform_indices = @transform_3, window_bounds = array<i64: 64, 512>}]} {
    %c0_i32 = arith.constant 0 : i32
    %0 = arith.cmpi eq, %arg2, %c0_i32 : i32
    %1 = arith.extui %0 : i1 to i32
    %c0_i32_0 = arith.constant 0 : i32
    %2 = arith.cmpi ne, %1, %c0_i32_0 : i32
    scf.if %2 {
      %cst_10 = arith.constant 0.000000e+00 : f32
      %12 = vector.broadcast %cst_10 : f32 to vector<64x512xf32>
      %c0_11 = arith.constant 0 : index
      %c0_12 = arith.constant 0 : index
      %13 = vector.load %arg7[%c0_11, %c0_12] : memref<64x512xf32, #tpu.memory_space<vmem>>, vector<64x512xf32>
      tpu.vector_store %arg7[%c0_11, %c0_12], %12 {strides = array<i32>} : memref<64x512xf32, #tpu.memory_space<vmem>>, vector<64x512xf32>,
    } else {
    }
    %c0 = arith.constant 0 : index
    %c0_1 = arith.constant 0 : index
    %3 = vector.load %arg7[%c0, %c0_1] : memref<64x512xf32, #tpu.memory_space<vmem>>, vector<64x512xf32>
    %c0_2 = arith.constant 0 : index
    %c0_3 = arith.constant 0 : index
    %4 = vector.load %arg3[%c0_2, %c0_3] : memref<64x128xbf16, #tpu.memory_space<vmem>>, vector<64x128xbf16>
    %c0_4 = arith.constant 0 : index
    %c0_5 = arith.constant 0 : index
    %5 = vector.load %arg4[%c0_4, %c0_5] : memref<128x512xbf16, #tpu.memory_space<vmem>>, vector<128x512xbf16>
    %cst = arith.constant dense<0.000000e+00> : vector<64x512xf32>
    %6 = tpu.matmul %4, %5, %cst {dimension_numbers = #tpu.dot_dimension_numbers<[1], [0], [0], [1], [0, 0, 1, 1], [], []>} : vector<64x128xbf16>, vector<128x512xbf16>, vector<64x512xf32> -> vector<64x512xf32>
    %7 = arith.addf %3, %6 : vector<64x512xf32>
    %c0_6 = arith.constant 0 : index
    %c0_7 = arith.constant 0 : index
    %8 = vector.load %arg7[%c0_6, %c0_7] : memref<64x512xf32, #tpu.memory_space<vmem>>, vector<64x512xf32>
    tpu.vector_store %arg7[%c0_6, %c0_7], %7 {strides = array<i32>} : memref<64x512xf32, #tpu.memory_space<vmem>>, vector<64x512xf32>,
    %c0_i32_8 = arith.constant 0 : i32
    %9 = arith.cmpi eq, %arg2, %c0_i32_8 : i32
    %10 = arith.extui %9 : i1 to i32
    %c0_i32_9 = arith.constant 0 : i32
    %11 = arith.cmpi ne, %10, %c0_i32_9 : i32
    scf.if %11 {
      %c0_10 = arith.constant 0 : index
      %c0_11 = arith.constant 0 : index
      %12 = vector.load %arg7[%c0_10, %c0_11] : memref<64x512xf32, #tpu.memory_space<vmem>>, vector<64x512xf32>
      %c0_12 = arith.constant 0 : index
      %c0_13 = arith.constant 0 : index
      %13 = vector.load %arg5[%c0_12, %c0_13] : memref<1x512xf32, #tpu.memory_space<vmem>>, vector<1x512xf32>
      %14 = vector.broadcast %13 : vector<1x512xf32> to vector<64x512xf32>
      %15 = arith.addf %12, %14 : vector<64x512xf32>
      %c0_14 = arith.constant 0 : index
      %c0_15 = arith.constant 0 : index
      %16 = vector.load %arg6[%c0_14, %c0_15] : memref<64x512xf32, #tpu.memory_space<vmem>>, vector<64x512xf32>
      tpu.vector_store %arg6[%c0_14, %c0_15], %15 {strides = array<i32>} : memref<64x512xf32, #tpu.memory_space<vmem>>, vector<64x512xf32>,
    } else {
    }
    return
  }
  func.func @transform_0(%arg0: i32, %arg1: i32, %arg2: i32) -> (i32, i32) {
    %c0_i32 = arith.constant 0 : i32
    return %arg0, %arg2 : i32, i32
  }
  func.func @transform_1(%arg0: i32, %arg1: i32, %arg2: i32) -> (i32, i32) {
    %c0_i32 = arith.constant 0 : i32
    return %arg2, %arg1 : i32, i32
  }
  func.func @transform_2(%arg0: i32, %arg1: i32, %arg2: i32) -> (i32, i32) {
    %c0_i32 = arith.constant 0 : i32
    %c0_i32_0 = arith.constant 0 : i32
    return %c0_i32, %arg1 : i32, i32
  }
  func.func @transform_3(%arg0: i32, %arg1: i32, %arg2: i32) -> (i32, i32) {
    %c0_i32 = arith.constant 0 : i32
    return %arg0, %arg1 : i32, i32
  }
}

module attributes {stable_mosaic.version = 11 : i64} {
  func.func @lstm_rec_kernel(%arg0: i32, %arg1: memref<8x8x512xf32, #tpu.memory_space<vmem>>, %arg2: memref<128x512xbf16, #tpu.memory_space<vmem>>, %arg3: memref<8x1xi32, #tpu.memory_space<vmem>>, %arg4: memref<8x8x128xf32, #tpu.memory_space<vmem>>, %arg5: memref<8x128xf32, #tpu.memory_space<vmem>>, %arg6: memref<8x128xf32, #tpu.memory_space<vmem>>) attributes {dimension_semantics = [#tpu.dimension_semantics<arbitrary>], iteration_bounds = array<i64: 1>, scalar_prefetch = 0 : i64, scratch_operands = 0 : i64, tpu.core_type = #tpu.core_type<tc>, window_params = [{transform_indices = @transform_0, window_bounds = array<i64: 8, 8, 512>}, {pipeline_mode = #tpu.pipeline_mode<synchronous>, transform_indices = @transform_1, window_bounds = array<i64: 128, 512>}, {pipeline_mode = #tpu.pipeline_mode<synchronous>, transform_indices = @transform_2, window_bounds = array<i64: 8, 1>}, {transform_indices = @transform_3, window_bounds = array<i64: 8, 8, 128>}, {pipeline_mode = #tpu.pipeline_mode<synchronous>, transform_indices = @transform_4, window_bounds = array<i64: 8, 128>}, {pipeline_mode = #tpu.pipeline_mode<synchronous>, transform_indices = @transform_5, window_bounds = array<i64: 8, 128>}]} {
    %c0_i32 = arith.constant 0 : i32
    %0 = arith.cmpi eq, %arg0, %c0_i32 : i32
    %1 = arith.extui %0 : i1 to i32
    %c0_i32_0 = arith.constant 0 : i32
    %2 = arith.cmpi ne, %1, %c0_i32_0 : i32
    scf.if %2 {
      %cst_93 = arith.constant 0.000000e+00 : f32
      %450 = vector.broadcast %cst_93 : f32 to vector<8x128xf32>
      %c0_94 = arith.constant 0 : index
      %c0_95 = arith.constant 0 : index
      %451 = vector.load %arg5[%c0_94, %c0_95] : memref<8x128xf32, #tpu.memory_space<vmem>>, vector<8x128xf32>
      tpu.vector_store %arg5[%c0_94, %c0_95], %450 {strides = array<i32>} : memref<8x128xf32, #tpu.memory_space<vmem>>, vector<8x128xf32>,
      %cst_96 = arith.constant 0.000000e+00 : f32
      %452 = vector.broadcast %cst_96 : f32 to vector<8x128xf32>
      %c0_97 = arith.constant 0 : index
      %c0_98 = arith.constant 0 : index
      %453 = vector.load %arg6[%c0_97, %c0_98] : memref<8x128xf32, #tpu.memory_space<vmem>>, vector<8x128xf32>
      tpu.vector_store %arg6[%c0_97, %c0_98], %452 {strides = array<i32>} : memref<8x128xf32, #tpu.memory_space<vmem>>, vector<8x128xf32>,
    } else {
    }
    %c0 = arith.constant 0 : index
    %c0_1 = arith.constant 0 : index
    %3 = vector.load %arg2[%c0, %c0_1] : memref<128x512xbf16, #tpu.memory_space<vmem>>, vector<128x512xbf16>
    %c0_2 = arith.constant 0 : index
    %c0_3 = arith.constant 0 : index
    %4 = vector.load %arg3[%c0_2, %c0_3] : memref<8x1xi32, #tpu.memory_space<vmem>>, vector<8x1xi32>
    %c8_i32 = arith.constant 8 : i32
    %5 = arith.muli %arg0, %c8_i32 : i32
    %c0_4 = arith.constant 0 : index
    %c0_5 = arith.constant 0 : index
    %6 = vector.load %arg5[%c0_4, %c0_5] : memref<8x128xf32, #tpu.memory_space<vmem>>, vector<8x128xf32>
    %c0_6 = arith.constant 0 : index
    %c0_7 = arith.constant 0 : index
    %7 = vector.load %arg6[%c0_6, %c0_7] : memref<8x128xf32, #tpu.memory_space<vmem>>, vector<8x128xf32>
    %c0_i32_8 = arith.constant 0 : i32
    %8 = arith.index_cast %c0_i32_8 : i32 to index
    %c0_9 = arith.constant 0 : index
    %c0_10 = arith.constant 0 : index
    %9 = vector.load %arg1[%8, %c0_9, %c0_10] : memref<8x8x512xf32, #tpu.memory_space<vmem>>, vector<1x8x512xf32>
    %10 = vector.shape_cast %9 : vector<1x8x512xf32> to vector<8x512xf32>
    %11 = arith.truncf %6 : vector<8x128xf32> to vector<8x128xbf16>
    %cst = arith.constant dense<0.000000e+00> : vector<8x512xf32>
    %12 = tpu.matmul %11, %3, %cst {dimension_numbers = #tpu.dot_dimension_numbers<[1], [0], [0], [1], [0, 0, 1, 1], [], []>} : vector<8x128xbf16>, vector<128x512xbf16>, vector<8x512xf32> -> vector<8x512xf32>
    %13 = arith.addf %10, %12 : vector<8x512xf32>
    %14 = vector.extract_strided_slice %13 {offsets = [0, 0], sizes = [8, 128], strides = [1, 1]} : vector<8x512xf32> to vector<8x128xf32>
    %15 = arith.negf %14 : vector<8x128xf32>
    %16 = math.exp %15 : vector<8x128xf32>
    %cst_11 = arith.constant 1.000000e+00 : f32
    %17 = vector.broadcast %cst_11 : f32 to vector<8x128xf32>
    %18 = arith.addf %17, %16 : vector<8x128xf32>
    %19 = arith.divf %17, %18 : vector<8x128xf32>
    %20 = vector.extract_strided_slice %13 {offsets = [0, 128], sizes = [8, 128], strides = [1, 1]} : vector<8x512xf32> to vector<8x128xf32>
    %21 = arith.negf %20 : vector<8x128xf32>
    %22 = math.exp %21 : vector<8x128xf32>
    %cst_12 = arith.constant 1.000000e+00 : f32
    %23 = vector.broadcast %cst_12 : f32 to vector<8x128xf32>
    %24 = arith.addf %23, %22 : vector<8x128xf32>
    %25 = arith.divf %23, %24 : vector<8x128xf32>
    %26 = vector.extract_strided_slice %13 {offsets = [0, 256], sizes = [8, 128], strides = [1, 1]} : vector<8x512xf32> to vector<8x128xf32>
    %27 = math.tanh %26 : vector<8x128xf32>
    %28 = vector.extract_strided_slice %13 {offsets = [0, 384], sizes = [8, 128], strides = [1, 1]} : vector<8x512xf32> to vector<8x128xf32>
    %29 = arith.negf %28 : vector<8x128xf32>
    %30 = math.exp %29 : vector<8x128xf32>
    %cst_13 = arith.constant 1.000000e+00 : f32
    %31 = vector.broadcast %cst_13 : f32 to vector<8x128xf32>
    %32 = arith.addf %31, %30 : vector<8x128xf32>
    %33 = arith.divf %31, %32 : vector<8x128xf32>
    %34 = arith.mulf %25, %7 : vector<8x128xf32>
    %35 = arith.mulf %19, %27 : vector<8x128xf32>
    %36 = arith.addf %34, %35 : vector<8x128xf32>
    %37 = math.tanh %36 : vector<8x128xf32>
    %38 = arith.mulf %33, %37 : vector<8x128xf32>
    %39 = arith.addi %5, %c0_i32_8 : i32
    %40 = vector.broadcast %39 : i32 to vector<8x1xi32>
    %41 = arith.cmpi sgt, %4, %40 : vector<8x1xi32>
    %42 = arith.extui %41 : vector<8x1xi1> to vector<8x1xi32>
    %43 = arith.sitofp %42 : vector<8x1xi32> to vector<8x1xf32>
    %44 = vector.broadcast %43 : vector<8x1xf32> to vector<8x128xf32>
    %45 = arith.mulf %44, %38 : vector<8x128xf32>
    %46 = vector.shape_cast %45 : vector<8x128xf32> to vector<1x8x128xf32>
    %47 = arith.index_cast %c0_i32_8 : i32 to index
    %c0_14 = arith.constant 0 : index
    %c0_15 = arith.constant 0 : index
    %48 = vector.load %arg4[%47, %c0_14, %c0_15] : memref<8x8x128xf32, #tpu.memory_space<vmem>>, vector<1x8x128xf32>
    tpu.vector_store %arg4[%47, %c0_14, %c0_15], %46 {strides = array<i32>} : memref<8x8x128xf32, #tpu.memory_space<vmem>>, vector<1x8x128xf32>,
    %49 = vector.broadcast %43 : vector<8x1xf32> to vector<8x128xf32>
    %50 = arith.mulf %49, %38 : vector<8x128xf32>
    %cst_16 = arith.constant 1.000000e+00 : f32
    %51 = vector.broadcast %cst_16 : f32 to vector<8x1xf32>
    %52 = arith.subf %51, %43 : vector<8x1xf32>
    %53 = vector.broadcast %52 : vector<8x1xf32> to vector<8x128xf32>
    %54 = arith.mulf %53, %6 : vector<8x128xf32>
    %55 = arith.addf %50, %54 : vector<8x128xf32>
    %56 = vector.broadcast %43 : vector<8x1xf32> to vector<8x128xf32>
    %57 = arith.mulf %56, %36 : vector<8x128xf32>
    %cst_17 = arith.constant 1.000000e+00 : f32
    %58 = vector.broadcast %cst_17 : f32 to vector<8x1xf32>
    %59 = arith.subf %58, %43 : vector<8x1xf32>
    %60 = vector.broadcast %59 : vector<8x1xf32> to vector<8x128xf32>
    %61 = arith.mulf %60, %7 : vector<8x128xf32>
    %62 = arith.addf %57, %61 : vector<8x128xf32>
    %c1_i32 = arith.constant 1 : i32
    %63 = arith.index_cast %c1_i32 : i32 to index
    %c0_18 = arith.constant 0 : index
    %c0_19 = arith.constant 0 : index
    %64 = vector.load %arg1[%63, %c0_18, %c0_19] : memref<8x8x512xf32, #tpu.memory_space<vmem>>, vector<1x8x512xf32>
    %65 = vector.shape_cast %64 : vector<1x8x512xf32> to vector<8x512xf32>
    %66 = arith.truncf %55 : vector<8x128xf32> to vector<8x128xbf16>
    %cst_20 = arith.constant dense<0.000000e+00> : vector<8x512xf32>
    %67 = tpu.matmul %66, %3, %cst_20 {dimension_numbers = #tpu.dot_dimension_numbers<[1], [0], [0], [1], [0, 0, 1, 1], [], []>} : vector<8x128xbf16>, vector<128x512xbf16>, vector<8x512xf32> -> vector<8x512xf32>
    %68 = arith.addf %65, %67 : vector<8x512xf32>
    %69 = vector.extract_strided_slice %68 {offsets = [0, 0], sizes = [8, 128], strides = [1, 1]} : vector<8x512xf32> to vector<8x128xf32>
    %70 = arith.negf %69 : vector<8x128xf32>
    %71 = math.exp %70 : vector<8x128xf32>
    %cst_21 = arith.constant 1.000000e+00 : f32
    %72 = vector.broadcast %cst_21 : f32 to vector<8x128xf32>
    %73 = arith.addf %72, %71 : vector<8x128xf32>
    %74 = arith.divf %72, %73 : vector<8x128xf32>
    %75 = vector.extract_strided_slice %68 {offsets = [0, 128], sizes = [8, 128], strides = [1, 1]} : vector<8x512xf32> to vector<8x128xf32>
    %76 = arith.negf %75 : vector<8x128xf32>
    %77 = math.exp %76 : vector<8x128xf32>
    %cst_22 = arith.constant 1.000000e+00 : f32
    %78 = vector.broadcast %cst_22 : f32 to vector<8x128xf32>
    %79 = arith.addf %78, %77 : vector<8x128xf32>
    %80 = arith.divf %78, %79 : vector<8x128xf32>
    %81 = vector.extract_strided_slice %68 {offsets = [0, 256], sizes = [8, 128], strides = [1, 1]} : vector<8x512xf32> to vector<8x128xf32>
    %82 = math.tanh %81 : vector<8x128xf32>
    %83 = vector.extract_strided_slice %68 {offsets = [0, 384], sizes = [8, 128], strides = [1, 1]} : vector<8x512xf32> to vector<8x128xf32>
    %84 = arith.negf %83 : vector<8x128xf32>
    %85 = math.exp %84 : vector<8x128xf32>
    %cst_23 = arith.constant 1.000000e+00 : f32
    %86 = vector.broadcast %cst_23 : f32 to vector<8x128xf32>
    %87 = arith.addf %86, %85 : vector<8x128xf32>
    %88 = arith.divf %86, %87 : vector<8x128xf32>
    %89 = arith.mulf %80, %62 : vector<8x128xf32>
    %90 = arith.mulf %74, %82 : vector<8x128xf32>
    %91 = arith.addf %89, %90 : vector<8x128xf32>
    %92 = math.tanh %91 : vector<8x128xf32>
    %93 = arith.mulf %88, %92 : vector<8x128xf32>
    %94 = arith.addi %5, %c1_i32 : i32
    %95 = vector.broadcast %94 : i32 to vector<8x1xi32>
    %96 = arith.cmpi sgt, %4, %95 : vector<8x1xi32>
    %97 = arith.extui %96 : vector<8x1xi1> to vector<8x1xi32>
    %98 = arith.sitofp %97 : vector<8x1xi32> to vector<8x1xf32>
    %99 = vector.broadcast %98 : vector<8x1xf32> to vector<8x128xf32>
    %100 = arith.mulf %99, %93 : vector<8x128xf32>
    %101 = vector.shape_cast %100 : vector<8x128xf32> to vector<1x8x128xf32>
    %102 = arith.index_cast %c1_i32 : i32 to index
    %c0_24 = arith.constant 0 : index
    %c0_25 = arith.constant 0 : index
    %103 = vector.load %arg4[%102, %c0_24, %c0_25] : memref<8x8x128xf32, #tpu.memory_space<vmem>>, vector<1x8x128xf32>
    tpu.vector_store %arg4[%102, %c0_24, %c0_25], %101 {strides = array<i32>} : memref<8x8x128xf32, #tpu.memory_space<vmem>>, vector<1x8x128xf32>,
    %104 = vector.broadcast %98 : vector<8x1xf32> to vector<8x128xf32>
    %105 = arith.mulf %104, %93 : vector<8x128xf32>
    %cst_26 = arith.constant 1.000000e+00 : f32
    %106 = vector.broadcast %cst_26 : f32 to vector<8x1xf32>
    %107 = arith.subf %106, %98 : vector<8x1xf32>
    %108 = vector.broadcast %107 : vector<8x1xf32> to vector<8x128xf32>
    %109 = arith.mulf %108, %55 : vector<8x128xf32>
    %110 = arith.addf %105, %109 : vector<8x128xf32>
    %111 = vector.broadcast %98 : vector<8x1xf32> to vector<8x128xf32>
    %112 = arith.mulf %111, %91 : vector<8x128xf32>
    %cst_27 = arith.constant 1.000000e+00 : f32
    %113 = vector.broadcast %cst_27 : f32 to vector<8x1xf32>
    %114 = arith.subf %113, %98 : vector<8x1xf32>
    %115 = vector.broadcast %114 : vector<8x1xf32> to vector<8x128xf32>
    %116 = arith.mulf %115, %62 : vector<8x128xf32>
    %117 = arith.addf %112, %116 : vector<8x128xf32>
    %c2_i32 = arith.constant 2 : i32
    %118 = arith.index_cast %c2_i32 : i32 to index
    %c0_28 = arith.constant 0 : index
    %c0_29 = arith.constant 0 : index
    %119 = vector.load %arg1[%118, %c0_28, %c0_29] : memref<8x8x512xf32, #tpu.memory_space<vmem>>, vector<1x8x512xf32>
    %120 = vector.shape_cast %119 : vector<1x8x512xf32> to vector<8x512xf32>
    %121 = arith.truncf %110 : vector<8x128xf32> to vector<8x128xbf16>
    %cst_30 = arith.constant dense<0.000000e+00> : vector<8x512xf32>
    %122 = tpu.matmul %121, %3, %cst_30 {dimension_numbers = #tpu.dot_dimension_numbers<[1], [0], [0], [1], [0, 0, 1, 1], [], []>} : vector<8x128xbf16>, vector<128x512xbf16>, vector<8x512xf32> -> vector<8x512xf32>
    %123 = arith.addf %120, %122 : vector<8x512xf32>
    %124 = vector.extract_strided_slice %123 {offsets = [0, 0], sizes = [8, 128], strides = [1, 1]} : vector<8x512xf32> to vector<8x128xf32>
    %125 = arith.negf %124 : vector<8x128xf32>
    %126 = math.exp %125 : vector<8x128xf32>
    %cst_31 = arith.constant 1.000000e+00 : f32
    %127 = vector.broadcast %cst_31 : f32 to vector<8x128xf32>
    %128 = arith.addf %127, %126 : vector<8x128xf32>
    %129 = arith.divf %127, %128 : vector<8x128xf32>
    %130 = vector.extract_strided_slice %123 {offsets = [0, 128], sizes = [8, 128], strides = [1, 1]} : vector<8x512xf32> to vector<8x128xf32>
    %131 = arith.negf %130 : vector<8x128xf32>
    %132 = math.exp %131 : vector<8x128xf32>
    %cst_32 = arith.constant 1.000000e+00 : f32
    %133 = vector.broadcast %cst_32 : f32 to vector<8x128xf32>
    %134 = arith.addf %133, %132 : vector<8x128xf32>
    %135 = arith.divf %133, %134 : vector<8x128xf32>
    %136 = vector.extract_strided_slice %123 {offsets = [0, 256], sizes = [8, 128], strides = [1, 1]} : vector<8x512xf32> to vector<8x128xf32>
    %137 = math.tanh %136 : vector<8x128xf32>
    %138 = vector.extract_strided_slice %123 {offsets = [0, 384], sizes = [8, 128], strides = [1, 1]} : vector<8x512xf32> to vector<8x128xf32>
    %139 = arith.negf %138 : vector<8x128xf32>
    %140 = math.exp %139 : vector<8x128xf32>
    %cst_33 = arith.constant 1.000000e+00 : f32
    %141 = vector.broadcast %cst_33 : f32 to vector<8x128xf32>
    %142 = arith.addf %141, %140 : vector<8x128xf32>
    %143 = arith.divf %141, %142 : vector<8x128xf32>
    %144 = arith.mulf %135, %117 : vector<8x128xf32>
    %145 = arith.mulf %129, %137 : vector<8x128xf32>
    %146 = arith.addf %144, %145 : vector<8x128xf32>
    %147 = math.tanh %146 : vector<8x128xf32>
    %148 = arith.mulf %143, %147 : vector<8x128xf32>
    %149 = arith.addi %5, %c2_i32 : i32
    %150 = vector.broadcast %149 : i32 to vector<8x1xi32>
    %151 = arith.cmpi sgt, %4, %150 : vector<8x1xi32>
    %152 = arith.extui %151 : vector<8x1xi1> to vector<8x1xi32>
    %153 = arith.sitofp %152 : vector<8x1xi32> to vector<8x1xf32>
    %154 = vector.broadcast %153 : vector<8x1xf32> to vector<8x128xf32>
    %155 = arith.mulf %154, %148 : vector<8x128xf32>
    %156 = vector.shape_cast %155 : vector<8x128xf32> to vector<1x8x128xf32>
    %157 = arith.index_cast %c2_i32 : i32 to index
    %c0_34 = arith.constant 0 : index
    %c0_35 = arith.constant 0 : index
    %158 = vector.load %arg4[%157, %c0_34, %c0_35] : memref<8x8x128xf32, #tpu.memory_space<vmem>>, vector<1x8x128xf32>
    tpu.vector_store %arg4[%157, %c0_34, %c0_35], %156 {strides = array<i32>} : memref<8x8x128xf32, #tpu.memory_space<vmem>>, vector<1x8x128xf32>,
    %159 = vector.broadcast %153 : vector<8x1xf32> to vector<8x128xf32>
    %160 = arith.mulf %159, %148 : vector<8x128xf32>
    %cst_36 = arith.constant 1.000000e+00 : f32
    %161 = vector.broadcast %cst_36 : f32 to vector<8x1xf32>
    %162 = arith.subf %161, %153 : vector<8x1xf32>
    %163 = vector.broadcast %162 : vector<8x1xf32> to vector<8x128xf32>
    %164 = arith.mulf %163, %110 : vector<8x128xf32>
    %165 = arith.addf %160, %164 : vector<8x128xf32>
    %166 = vector.broadcast %153 : vector<8x1xf32> to vector<8x128xf32>
    %167 = arith.mulf %166, %146 : vector<8x128xf32>
    %cst_37 = arith.constant 1.000000e+00 : f32
    %168 = vector.broadcast %cst_37 : f32 to vector<8x1xf32>
    %169 = arith.subf %168, %153 : vector<8x1xf32>
    %170 = vector.broadcast %169 : vector<8x1xf32> to vector<8x128xf32>
    %171 = arith.mulf %170, %117 : vector<8x128xf32>
    %172 = arith.addf %167, %171 : vector<8x128xf32>
    %c3_i32 = arith.constant 3 : i32
    %173 = arith.index_cast %c3_i32 : i32 to index
    %c0_38 = arith.constant 0 : index
    %c0_39 = arith.constant 0 : index
    %174 = vector.load %arg1[%173, %c0_38, %c0_39] : memref<8x8x512xf32, #tpu.memory_space<vmem>>, vector<1x8x512xf32>
    %175 = vector.shape_cast %174 : vector<1x8x512xf32> to vector<8x512xf32>
    %176 = arith.truncf %165 : vector<8x128xf32> to vector<8x128xbf16>
    %cst_40 = arith.constant dense<0.000000e+00> : vector<8x512xf32>
    %177 = tpu.matmul %176, %3, %cst_40 {dimension_numbers = #tpu.dot_dimension_numbers<[1], [0], [0], [1], [0, 0, 1, 1], [], []>} : vector<8x128xbf16>, vector<128x512xbf16>, vector<8x512xf32> -> vector<8x512xf32>
    %178 = arith.addf %175, %177 : vector<8x512xf32>
    %179 = vector.extract_strided_slice %178 {offsets = [0, 0], sizes = [8, 128], strides = [1, 1]} : vector<8x512xf32> to vector<8x128xf32>
    %180 = arith.negf %179 : vector<8x128xf32>
    %181 = math.exp %180 : vector<8x128xf32>
    %cst_41 = arith.constant 1.000000e+00 : f32
    %182 = vector.broadcast %cst_41 : f32 to vector<8x128xf32>
    %183 = arith.addf %182, %181 : vector<8x128xf32>
    %184 = arith.divf %182, %183 : vector<8x128xf32>
    %185 = vector.extract_strided_slice %178 {offsets = [0, 128], sizes = [8, 128], strides = [1, 1]} : vector<8x512xf32> to vector<8x128xf32>
    %186 = arith.negf %185 : vector<8x128xf32>
    %187 = math.exp %186 : vector<8x128xf32>
    %cst_42 = arith.constant 1.000000e+00 : f32
    %188 = vector.broadcast %cst_42 : f32 to vector<8x128xf32>
    %189 = arith.addf %188, %187 : vector<8x128xf32>
    %190 = arith.divf %188, %189 : vector<8x128xf32>
    %191 = vector.extract_strided_slice %178 {offsets = [0, 256], sizes = [8, 128], strides = [1, 1]} : vector<8x512xf32> to vector<8x128xf32>
    %192 = math.tanh %191 : vector<8x128xf32>
    %193 = vector.extract_strided_slice %178 {offsets = [0, 384], sizes = [8, 128], strides = [1, 1]} : vector<8x512xf32> to vector<8x128xf32>
    %194 = arith.negf %193 : vector<8x128xf32>
    %195 = math.exp %194 : vector<8x128xf32>
    %cst_43 = arith.constant 1.000000e+00 : f32
    %196 = vector.broadcast %cst_43 : f32 to vector<8x128xf32>
    %197 = arith.addf %196, %195 : vector<8x128xf32>
    %198 = arith.divf %196, %197 : vector<8x128xf32>
    %199 = arith.mulf %190, %172 : vector<8x128xf32>
    %200 = arith.mulf %184, %192 : vector<8x128xf32>
    %201 = arith.addf %199, %200 : vector<8x128xf32>
    %202 = math.tanh %201 : vector<8x128xf32>
    %203 = arith.mulf %198, %202 : vector<8x128xf32>
    %204 = arith.addi %5, %c3_i32 : i32
    %205 = vector.broadcast %204 : i32 to vector<8x1xi32>
    %206 = arith.cmpi sgt, %4, %205 : vector<8x1xi32>
    %207 = arith.extui %206 : vector<8x1xi1> to vector<8x1xi32>
    %208 = arith.sitofp %207 : vector<8x1xi32> to vector<8x1xf32>
    %209 = vector.broadcast %208 : vector<8x1xf32> to vector<8x128xf32>
    %210 = arith.mulf %209, %203 : vector<8x128xf32>
    %211 = vector.shape_cast %210 : vector<8x128xf32> to vector<1x8x128xf32>
    %212 = arith.index_cast %c3_i32 : i32 to index
    %c0_44 = arith.constant 0 : index
    %c0_45 = arith.constant 0 : index
    %213 = vector.load %arg4[%212, %c0_44, %c0_45] : memref<8x8x128xf32, #tpu.memory_space<vmem>>, vector<1x8x128xf32>
    tpu.vector_store %arg4[%212, %c0_44, %c0_45], %211 {strides = array<i32>} : memref<8x8x128xf32, #tpu.memory_space<vmem>>, vector<1x8x128xf32>,
    %214 = vector.broadcast %208 : vector<8x1xf32> to vector<8x128xf32>
    %215 = arith.mulf %214, %203 : vector<8x128xf32>
    %cst_46 = arith.constant 1.000000e+00 : f32
    %216 = vector.broadcast %cst_46 : f32 to vector<8x1xf32>
    %217 = arith.subf %216, %208 : vector<8x1xf32>
    %218 = vector.broadcast %217 : vector<8x1xf32> to vector<8x128xf32>
    %219 = arith.mulf %218, %165 : vector<8x128xf32>
    %220 = arith.addf %215, %219 : vector<8x128xf32>
    %221 = vector.broadcast %208 : vector<8x1xf32> to vector<8x128xf32>
    %222 = arith.mulf %221, %201 : vector<8x128xf32>
    %cst_47 = arith.constant 1.000000e+00 : f32
    %223 = vector.broadcast %cst_47 : f32 to vector<8x1xf32>
    %224 = arith.subf %223, %208 : vector<8x1xf32>
    %225 = vector.broadcast %224 : vector<8x1xf32> to vector<8x128xf32>
    %226 = arith.mulf %225, %172 : vector<8x128xf32>
    %227 = arith.addf %222, %226 : vector<8x128xf32>
    %c4_i32 = arith.constant 4 : i32
    %228 = arith.index_cast %c4_i32 : i32 to index
    %c0_48 = arith.constant 0 : index
    %c0_49 = arith.constant 0 : index
    %229 = vector.load %arg1[%228, %c0_48, %c0_49] : memref<8x8x512xf32, #tpu.memory_space<vmem>>, vector<1x8x512xf32>
    %230 = vector.shape_cast %229 : vector<1x8x512xf32> to vector<8x512xf32>
    %231 = arith.truncf %220 : vector<8x128xf32> to vector<8x128xbf16>
    %cst_50 = arith.constant dense<0.000000e+00> : vector<8x512xf32>
    %232 = tpu.matmul %231, %3, %cst_50 {dimension_numbers = #tpu.dot_dimension_numbers<[1], [0], [0], [1], [0, 0, 1, 1], [], []>} : vector<8x128xbf16>, vector<128x512xbf16>, vector<8x512xf32> -> vector<8x512xf32>
    %233 = arith.addf %230, %232 : vector<8x512xf32>
    %234 = vector.extract_strided_slice %233 {offsets = [0, 0], sizes = [8, 128], strides = [1, 1]} : vector<8x512xf32> to vector<8x128xf32>
    %235 = arith.negf %234 : vector<8x128xf32>
    %236 = math.exp %235 : vector<8x128xf32>
    %cst_51 = arith.constant 1.000000e+00 : f32
    %237 = vector.broadcast %cst_51 : f32 to vector<8x128xf32>
    %238 = arith.addf %237, %236 : vector<8x128xf32>
    %239 = arith.divf %237, %238 : vector<8x128xf32>
    %240 = vector.extract_strided_slice %233 {offsets = [0, 128], sizes = [8, 128], strides = [1, 1]} : vector<8x512xf32> to vector<8x128xf32>
    %241 = arith.negf %240 : vector<8x128xf32>
    %242 = math.exp %241 : vector<8x128xf32>
    %cst_52 = arith.constant 1.000000e+00 : f32
    %243 = vector.broadcast %cst_52 : f32 to vector<8x128xf32>
    %244 = arith.addf %243, %242 : vector<8x128xf32>
    %245 = arith.divf %243, %244 : vector<8x128xf32>
    %246 = vector.extract_strided_slice %233 {offsets = [0, 256], sizes = [8, 128], strides = [1, 1]} : vector<8x512xf32> to vector<8x128xf32>
    %247 = math.tanh %246 : vector<8x128xf32>
    %248 = vector.extract_strided_slice %233 {offsets = [0, 384], sizes = [8, 128], strides = [1, 1]} : vector<8x512xf32> to vector<8x128xf32>
    %249 = arith.negf %248 : vector<8x128xf32>
    %250 = math.exp %249 : vector<8x128xf32>
    %cst_53 = arith.constant 1.000000e+00 : f32
    %251 = vector.broadcast %cst_53 : f32 to vector<8x128xf32>
    %252 = arith.addf %251, %250 : vector<8x128xf32>
    %253 = arith.divf %251, %252 : vector<8x128xf32>
    %254 = arith.mulf %245, %227 : vector<8x128xf32>
    %255 = arith.mulf %239, %247 : vector<8x128xf32>
    %256 = arith.addf %254, %255 : vector<8x128xf32>
    %257 = math.tanh %256 : vector<8x128xf32>
    %258 = arith.mulf %253, %257 : vector<8x128xf32>
    %259 = arith.addi %5, %c4_i32 : i32
    %260 = vector.broadcast %259 : i32 to vector<8x1xi32>
    %261 = arith.cmpi sgt, %4, %260 : vector<8x1xi32>
    %262 = arith.extui %261 : vector<8x1xi1> to vector<8x1xi32>
    %263 = arith.sitofp %262 : vector<8x1xi32> to vector<8x1xf32>
    %264 = vector.broadcast %263 : vector<8x1xf32> to vector<8x128xf32>
    %265 = arith.mulf %264, %258 : vector<8x128xf32>
    %266 = vector.shape_cast %265 : vector<8x128xf32> to vector<1x8x128xf32>
    %267 = arith.index_cast %c4_i32 : i32 to index
    %c0_54 = arith.constant 0 : index
    %c0_55 = arith.constant 0 : index
    %268 = vector.load %arg4[%267, %c0_54, %c0_55] : memref<8x8x128xf32, #tpu.memory_space<vmem>>, vector<1x8x128xf32>
    tpu.vector_store %arg4[%267, %c0_54, %c0_55], %266 {strides = array<i32>} : memref<8x8x128xf32, #tpu.memory_space<vmem>>, vector<1x8x128xf32>,
    %269 = vector.broadcast %263 : vector<8x1xf32> to vector<8x128xf32>
    %270 = arith.mulf %269, %258 : vector<8x128xf32>
    %cst_56 = arith.constant 1.000000e+00 : f32
    %271 = vector.broadcast %cst_56 : f32 to vector<8x1xf32>
    %272 = arith.subf %271, %263 : vector<8x1xf32>
    %273 = vector.broadcast %272 : vector<8x1xf32> to vector<8x128xf32>
    %274 = arith.mulf %273, %220 : vector<8x128xf32>
    %275 = arith.addf %270, %274 : vector<8x128xf32>
    %276 = vector.broadcast %263 : vector<8x1xf32> to vector<8x128xf32>
    %277 = arith.mulf %276, %256 : vector<8x128xf32>
    %cst_57 = arith.constant 1.000000e+00 : f32
    %278 = vector.broadcast %cst_57 : f32 to vector<8x1xf32>
    %279 = arith.subf %278, %263 : vector<8x1xf32>
    %280 = vector.broadcast %279 : vector<8x1xf32> to vector<8x128xf32>
    %281 = arith.mulf %280, %227 : vector<8x128xf32>
    %282 = arith.addf %277, %281 : vector<8x128xf32>
    %c5_i32 = arith.constant 5 : i32
    %283 = arith.index_cast %c5_i32 : i32 to index
    %c0_58 = arith.constant 0 : index
    %c0_59 = arith.constant 0 : index
    %284 = vector.load %arg1[%283, %c0_58, %c0_59] : memref<8x8x512xf32, #tpu.memory_space<vmem>>, vector<1x8x512xf32>
    %285 = vector.shape_cast %284 : vector<1x8x512xf32> to vector<8x512xf32>
    %286 = arith.truncf %275 : vector<8x128xf32> to vector<8x128xbf16>
    %cst_60 = arith.constant dense<0.000000e+00> : vector<8x512xf32>
    %287 = tpu.matmul %286, %3, %cst_60 {dimension_numbers = #tpu.dot_dimension_numbers<[1], [0], [0], [1], [0, 0, 1, 1], [], []>} : vector<8x128xbf16>, vector<128x512xbf16>, vector<8x512xf32> -> vector<8x512xf32>
    %288 = arith.addf %285, %287 : vector<8x512xf32>
    %289 = vector.extract_strided_slice %288 {offsets = [0, 0], sizes = [8, 128], strides = [1, 1]} : vector<8x512xf32> to vector<8x128xf32>
    %290 = arith.negf %289 : vector<8x128xf32>
    %291 = math.exp %290 : vector<8x128xf32>
    %cst_61 = arith.constant 1.000000e+00 : f32
    %292 = vector.broadcast %cst_61 : f32 to vector<8x128xf32>
    %293 = arith.addf %292, %291 : vector<8x128xf32>
    %294 = arith.divf %292, %293 : vector<8x128xf32>
    %295 = vector.extract_strided_slice %288 {offsets = [0, 128], sizes = [8, 128], strides = [1, 1]} : vector<8x512xf32> to vector<8x128xf32>
    %296 = arith.negf %295 : vector<8x128xf32>
    %297 = math.exp %296 : vector<8x128xf32>
    %cst_62 = arith.constant 1.000000e+00 : f32
    %298 = vector.broadcast %cst_62 : f32 to vector<8x128xf32>
    %299 = arith.addf %298, %297 : vector<8x128xf32>
    %300 = arith.divf %298, %299 : vector<8x128xf32>
    %301 = vector.extract_strided_slice %288 {offsets = [0, 256], sizes = [8, 128], strides = [1, 1]} : vector<8x512xf32> to vector<8x128xf32>
    %302 = math.tanh %301 : vector<8x128xf32>
    %303 = vector.extract_strided_slice %288 {offsets = [0, 384], sizes = [8, 128], strides = [1, 1]} : vector<8x512xf32> to vector<8x128xf32>
    %304 = arith.negf %303 : vector<8x128xf32>
    %305 = math.exp %304 : vector<8x128xf32>
    %cst_63 = arith.constant 1.000000e+00 : f32
    %306 = vector.broadcast %cst_63 : f32 to vector<8x128xf32>
    %307 = arith.addf %306, %305 : vector<8x128xf32>
    %308 = arith.divf %306, %307 : vector<8x128xf32>
    %309 = arith.mulf %300, %282 : vector<8x128xf32>
    %310 = arith.mulf %294, %302 : vector<8x128xf32>
    %311 = arith.addf %309, %310 : vector<8x128xf32>
    %312 = math.tanh %311 : vector<8x128xf32>
    %313 = arith.mulf %308, %312 : vector<8x128xf32>
    %314 = arith.addi %5, %c5_i32 : i32
    %315 = vector.broadcast %314 : i32 to vector<8x1xi32>
    %316 = arith.cmpi sgt, %4, %315 : vector<8x1xi32>
    %317 = arith.extui %316 : vector<8x1xi1> to vector<8x1xi32>
    %318 = arith.sitofp %317 : vector<8x1xi32> to vector<8x1xf32>
    %319 = vector.broadcast %318 : vector<8x1xf32> to vector<8x128xf32>
    %320 = arith.mulf %319, %313 : vector<8x128xf32>
    %321 = vector.shape_cast %320 : vector<8x128xf32> to vector<1x8x128xf32>
    %322 = arith.index_cast %c5_i32 : i32 to index
    %c0_64 = arith.constant 0 : index
    %c0_65 = arith.constant 0 : index
    %323 = vector.load %arg4[%322, %c0_64, %c0_65] : memref<8x8x128xf32, #tpu.memory_space<vmem>>, vector<1x8x128xf32>
    tpu.vector_store %arg4[%322, %c0_64, %c0_65], %321 {strides = array<i32>} : memref<8x8x128xf32, #tpu.memory_space<vmem>>, vector<1x8x128xf32>,
    %324 = vector.broadcast %318 : vector<8x1xf32> to vector<8x128xf32>
    %325 = arith.mulf %324, %313 : vector<8x128xf32>
    %cst_66 = arith.constant 1.000000e+00 : f32
    %326 = vector.broadcast %cst_66 : f32 to vector<8x1xf32>
    %327 = arith.subf %326, %318 : vector<8x1xf32>
    %328 = vector.broadcast %327 : vector<8x1xf32> to vector<8x128xf32>
    %329 = arith.mulf %328, %275 : vector<8x128xf32>
    %330 = arith.addf %325, %329 : vector<8x128xf32>
    %331 = vector.broadcast %318 : vector<8x1xf32> to vector<8x128xf32>
    %332 = arith.mulf %331, %311 : vector<8x128xf32>
    %cst_67 = arith.constant 1.000000e+00 : f32
    %333 = vector.broadcast %cst_67 : f32 to vector<8x1xf32>
    %334 = arith.subf %333, %318 : vector<8x1xf32>
    %335 = vector.broadcast %334 : vector<8x1xf32> to vector<8x128xf32>
    %336 = arith.mulf %335, %282 : vector<8x128xf32>
    %337 = arith.addf %332, %336 : vector<8x128xf32>
    %c6_i32 = arith.constant 6 : i32
    %338 = arith.index_cast %c6_i32 : i32 to index
    %c0_68 = arith.constant 0 : index
    %c0_69 = arith.constant 0 : index
    %339 = vector.load %arg1[%338, %c0_68, %c0_69] : memref<8x8x512xf32, #tpu.memory_space<vmem>>, vector<1x8x512xf32>
    %340 = vector.shape_cast %339 : vector<1x8x512xf32> to vector<8x512xf32>
    %341 = arith.truncf %330 : vector<8x128xf32> to vector<8x128xbf16>
    %cst_70 = arith.constant dense<0.000000e+00> : vector<8x512xf32>
    %342 = tpu.matmul %341, %3, %cst_70 {dimension_numbers = #tpu.dot_dimension_numbers<[1], [0], [0], [1], [0, 0, 1, 1], [], []>} : vector<8x128xbf16>, vector<128x512xbf16>, vector<8x512xf32> -> vector<8x512xf32>
    %343 = arith.addf %340, %342 : vector<8x512xf32>
    %344 = vector.extract_strided_slice %343 {offsets = [0, 0], sizes = [8, 128], strides = [1, 1]} : vector<8x512xf32> to vector<8x128xf32>
    %345 = arith.negf %344 : vector<8x128xf32>
    %346 = math.exp %345 : vector<8x128xf32>
    %cst_71 = arith.constant 1.000000e+00 : f32
    %347 = vector.broadcast %cst_71 : f32 to vector<8x128xf32>
    %348 = arith.addf %347, %346 : vector<8x128xf32>
    %349 = arith.divf %347, %348 : vector<8x128xf32>
    %350 = vector.extract_strided_slice %343 {offsets = [0, 128], sizes = [8, 128], strides = [1, 1]} : vector<8x512xf32> to vector<8x128xf32>
    %351 = arith.negf %350 : vector<8x128xf32>
    %352 = math.exp %351 : vector<8x128xf32>
    %cst_72 = arith.constant 1.000000e+00 : f32
    %353 = vector.broadcast %cst_72 : f32 to vector<8x128xf32>
    %354 = arith.addf %353, %352 : vector<8x128xf32>
    %355 = arith.divf %353, %354 : vector<8x128xf32>
    %356 = vector.extract_strided_slice %343 {offsets = [0, 256], sizes = [8, 128], strides = [1, 1]} : vector<8x512xf32> to vector<8x128xf32>
    %357 = math.tanh %356 : vector<8x128xf32>
    %358 = vector.extract_strided_slice %343 {offsets = [0, 384], sizes = [8, 128], strides = [1, 1]} : vector<8x512xf32> to vector<8x128xf32>
    %359 = arith.negf %358 : vector<8x128xf32>
    %360 = math.exp %359 : vector<8x128xf32>
    %cst_73 = arith.constant 1.000000e+00 : f32
    %361 = vector.broadcast %cst_73 : f32 to vector<8x128xf32>
    %362 = arith.addf %361, %360 : vector<8x128xf32>
    %363 = arith.divf %361, %362 : vector<8x128xf32>
    %364 = arith.mulf %355, %337 : vector<8x128xf32>
    %365 = arith.mulf %349, %357 : vector<8x128xf32>
    %366 = arith.addf %364, %365 : vector<8x128xf32>
    %367 = math.tanh %366 : vector<8x128xf32>
    %368 = arith.mulf %363, %367 : vector<8x128xf32>
    %369 = arith.addi %5, %c6_i32 : i32
    %370 = vector.broadcast %369 : i32 to vector<8x1xi32>
    %371 = arith.cmpi sgt, %4, %370 : vector<8x1xi32>
    %372 = arith.extui %371 : vector<8x1xi1> to vector<8x1xi32>
    %373 = arith.sitofp %372 : vector<8x1xi32> to vector<8x1xf32>
    %374 = vector.broadcast %373 : vector<8x1xf32> to vector<8x128xf32>
    %375 = arith.mulf %374, %368 : vector<8x128xf32>
    %376 = vector.shape_cast %375 : vector<8x128xf32> to vector<1x8x128xf32>
    %377 = arith.index_cast %c6_i32 : i32 to index
    %c0_74 = arith.constant 0 : index
    %c0_75 = arith.constant 0 : index
    %378 = vector.load %arg4[%377, %c0_74, %c0_75] : memref<8x8x128xf32, #tpu.memory_space<vmem>>, vector<1x8x128xf32>
    tpu.vector_store %arg4[%377, %c0_74, %c0_75], %376 {strides = array<i32>} : memref<8x8x128xf32, #tpu.memory_space<vmem>>, vector<1x8x128xf32>,
    %379 = vector.broadcast %373 : vector<8x1xf32> to vector<8x128xf32>
    %380 = arith.mulf %379, %368 : vector<8x128xf32>
    %cst_76 = arith.constant 1.000000e+00 : f32
    %381 = vector.broadcast %cst_76 : f32 to vector<8x1xf32>
    %382 = arith.subf %381, %373 : vector<8x1xf32>
    %383 = vector.broadcast %382 : vector<8x1xf32> to vector<8x128xf32>
    %384 = arith.mulf %383, %330 : vector<8x128xf32>
    %385 = arith.addf %380, %384 : vector<8x128xf32>
    %386 = vector.broadcast %373 : vector<8x1xf32> to vector<8x128xf32>
    %387 = arith.mulf %386, %366 : vector<8x128xf32>
    %cst_77 = arith.constant 1.000000e+00 : f32
    %388 = vector.broadcast %cst_77 : f32 to vector<8x1xf32>
    %389 = arith.subf %388, %373 : vector<8x1xf32>
    %390 = vector.broadcast %389 : vector<8x1xf32> to vector<8x128xf32>
    %391 = arith.mulf %390, %337 : vector<8x128xf32>
    %392 = arith.addf %387, %391 : vector<8x128xf32>
    %c7_i32 = arith.constant 7 : i32
    %393 = arith.index_cast %c7_i32 : i32 to index
    %c0_78 = arith.constant 0 : index
    %c0_79 = arith.constant 0 : index
    %394 = vector.load %arg1[%393, %c0_78, %c0_79] : memref<8x8x512xf32, #tpu.memory_space<vmem>>, vector<1x8x512xf32>
    %395 = vector.shape_cast %394 : vector<1x8x512xf32> to vector<8x512xf32>
    %396 = arith.truncf %385 : vector<8x128xf32> to vector<8x128xbf16>
    %cst_80 = arith.constant dense<0.000000e+00> : vector<8x512xf32>
    %397 = tpu.matmul %396, %3, %cst_80 {dimension_numbers = #tpu.dot_dimension_numbers<[1], [0], [0], [1], [0, 0, 1, 1], [], []>} : vector<8x128xbf16>, vector<128x512xbf16>, vector<8x512xf32> -> vector<8x512xf32>
    %398 = arith.addf %395, %397 : vector<8x512xf32>
    %399 = vector.extract_strided_slice %398 {offsets = [0, 0], sizes = [8, 128], strides = [1, 1]} : vector<8x512xf32> to vector<8x128xf32>
    %400 = arith.negf %399 : vector<8x128xf32>
    %401 = math.exp %400 : vector<8x128xf32>
    %cst_81 = arith.constant 1.000000e+00 : f32
    %402 = vector.broadcast %cst_81 : f32 to vector<8x128xf32>
    %403 = arith.addf %402, %401 : vector<8x128xf32>
    %404 = arith.divf %402, %403 : vector<8x128xf32>
    %405 = vector.extract_strided_slice %398 {offsets = [0, 128], sizes = [8, 128], strides = [1, 1]} : vector<8x512xf32> to vector<8x128xf32>
    %406 = arith.negf %405 : vector<8x128xf32>
    %407 = math.exp %406 : vector<8x128xf32>
    %cst_82 = arith.constant 1.000000e+00 : f32
    %408 = vector.broadcast %cst_82 : f32 to vector<8x128xf32>
    %409 = arith.addf %408, %407 : vector<8x128xf32>
    %410 = arith.divf %408, %409 : vector<8x128xf32>
    %411 = vector.extract_strided_slice %398 {offsets = [0, 256], sizes = [8, 128], strides = [1, 1]} : vector<8x512xf32> to vector<8x128xf32>
    %412 = math.tanh %411 : vector<8x128xf32>
    %413 = vector.extract_strided_slice %398 {offsets = [0, 384], sizes = [8, 128], strides = [1, 1]} : vector<8x512xf32> to vector<8x128xf32>
    %414 = arith.negf %413 : vector<8x128xf32>
    %415 = math.exp %414 : vector<8x128xf32>
    %cst_83 = arith.constant 1.000000e+00 : f32
    %416 = vector.broadcast %cst_83 : f32 to vector<8x128xf32>
    %417 = arith.addf %416, %415 : vector<8x128xf32>
    %418 = arith.divf %416, %417 : vector<8x128xf32>
    %419 = arith.mulf %410, %392 : vector<8x128xf32>
    %420 = arith.mulf %404, %412 : vector<8x128xf32>
    %421 = arith.addf %419, %420 : vector<8x128xf32>
    %422 = math.tanh %421 : vector<8x128xf32>
    %423 = arith.mulf %418, %422 : vector<8x128xf32>
    %424 = arith.addi %5, %c7_i32 : i32
    %425 = vector.broadcast %424 : i32 to vector<8x1xi32>
    %426 = arith.cmpi sgt, %4, %425 : vector<8x1xi32>
    %427 = arith.extui %426 : vector<8x1xi1> to vector<8x1xi32>
    %428 = arith.sitofp %427 : vector<8x1xi32> to vector<8x1xf32>
    %429 = vector.broadcast %428 : vector<8x1xf32> to vector<8x128xf32>
    %430 = arith.mulf %429, %423 : vector<8x128xf32>
    %431 = vector.shape_cast %430 : vector<8x128xf32> to vector<1x8x128xf32>
    %432 = arith.index_cast %c7_i32 : i32 to index
    %c0_84 = arith.constant 0 : index
    %c0_85 = arith.constant 0 : index
    %433 = vector.load %arg4[%432, %c0_84, %c0_85] : memref<8x8x128xf32, #tpu.memory_space<vmem>>, vector<1x8x128xf32>
    tpu.vector_store %arg4[%432, %c0_84, %c0_85], %431 {strides = array<i32>} : memref<8x8x128xf32, #tpu.memory_space<vmem>>, vector<1x8x128xf32>,
    %434 = vector.broadcast %428 : vector<8x1xf32> to vector<8x128xf32>
    %435 = arith.mulf %434, %423 : vector<8x128xf32>
    %cst_86 = arith.constant 1.000000e+00 : f32
    %436 = vector.broadcast %cst_86 : f32 to vector<8x1xf32>
    %437 = arith.subf %436, %428 : vector<8x1xf32>
    %438 = vector.broadcast %437 : vector<8x1xf32> to vector<8x128xf32>
    %439 = arith.mulf %438, %385 : vector<8x128xf32>
    %440 = arith.addf %435, %439 : vector<8x128xf32>
    %441 = vector.broadcast %428 : vector<8x1xf32> to vector<8x128xf32>
    %442 = arith.mulf %441, %421 : vector<8x128xf32>
    %cst_87 = arith.constant 1.000000e+00 : f32
    %443 = vector.broadcast %cst_87 : f32 to vector<8x1xf32>
    %444 = arith.subf %443, %428 : vector<8x1xf32>
    %445 = vector.broadcast %444 : vector<8x1xf32> to vector<8x128xf32>
    %446 = arith.mulf %445, %392 : vector<8x128xf32>
    %447 = arith.addf %442, %446 : vector<8x128xf32>
    %c8_i32_88 = arith.constant 8 : i32
    %c0_89 = arith.constant 0 : index
    %c0_90 = arith.constant 0 : index
    %448 = vector.load %arg5[%c0_89, %c0_90] : memref<8x128xf32, #tpu.memory_space<vmem>>, vector<8x128xf32>
    tpu.vector_store %arg5[%c0_89, %c0_90], %440 {strides = array<i32>} : memref<8x128xf32, #tpu.memory_space<vmem>>, vector<8x128xf32>,
    %c0_91 = arith.constant 0 : index
    %c0_92 = arith.constant 0 : index
    %449 = vector.load %arg6[%c0_91, %c0_92] : memref<8x128xf32, #tpu.memory_space<vmem>>, vector<8x128xf32>
    tpu.vector_store %arg6[%c0_91, %c0_92], %447 {strides = array<i32>} : memref<8x128xf32, #tpu.memory_space<vmem>>, vector<8x128xf32>,
    return
  }
  func.func @transform_0(%arg0: i32) -> (i32, i32, i32) {
    %c0_i32 = arith.constant 0 : i32
    %c0_i32_0 = arith.constant 0 : i32
    %c0_i32_1 = arith.constant 0 : i32
    return %arg0, %c0_i32, %c0_i32_0 : i32, i32, i32
  }
  func.func @transform_1(%arg0: i32) -> (i32, i32) {
    %c0_i32 = arith.constant 0 : i32
    %c0_i32_0 = arith.constant 0 : i32
    %c0_i32_1 = arith.constant 0 : i32
    return %c0_i32, %c0_i32_0 : i32, i32
  }
  func.func @transform_2(%arg0: i32) -> (i32, i32) {
    %c0_i32 = arith.constant 0 : i32
    %c0_i32_0 = arith.constant 0 : i32
    %c0_i32_1 = arith.constant 0 : i32
    return %c0_i32, %c0_i32_0 : i32, i32
  }
  func.func @transform_3(%arg0: i32) -> (i32, i32, i32) {
    %c0_i32 = arith.constant 0 : i32
    %c0_i32_0 = arith.constant 0 : i32
    %c0_i32_1 = arith.constant 0 : i32
    return %arg0, %c0_i32, %c0_i32_0 : i32, i32, i32
  }
  func.func @transform_4(%arg0: i32) -> (i32, i32) {
    %c0_i32 = arith.constant 0 : i32
    %c0_i32_0 = arith.constant 0 : i32
    %c0_i32_1 = arith.constant 0 : i32
    return %c0_i32, %c0_i32_0 : i32, i32
  }
  func.func @transform_5(%arg0: i32) -> (i32, i32) {
    %c0_i32 = arith.constant 0 : i32
    %c0_i32_0 = arith.constant 0 : i32
    %c0_i32_1 = arith.constant 0 : i32
    return %c0_i32, %c0_i32_0 : i32, i32
  }
}

module attributes {stable_mosaic.version = 11 : i64} {
  func.func @matmul_bias_kernel(%arg0: i32, %arg1: i32, %arg2: i32, %arg3: memref<64x128xbf16, #tpu.memory_space<vmem>>, %arg4: memref<128x128xbf16, #tpu.memory_space<vmem>>, %arg5: memref<1x128xf32, #tpu.memory_space<vmem>>, %arg6: memref<64x128xf32, #tpu.memory_space<vmem>>, %arg7: memref<64x128xf32, #tpu.memory_space<vmem>>) attributes {dimension_semantics = [#tpu.dimension_semantics<parallel>, #tpu.dimension_semantics<parallel>, #tpu.dimension_semantics<arbitrary>], iteration_bounds = array<i64: 1, 1, 1>, scalar_prefetch = 0 : i64, scratch_operands = 1 : i64, tpu.core_type = #tpu.core_type<tc>, window_params = [{transform_indices = @transform_0, window_bounds = array<i64: 64, 128>}, {transform_indices = @transform_1, window_bounds = array<i64: 128, 128>}, {transform_indices = @transform_2, window_bounds = array<i64: 1, 128>}, {transform_indices = @transform_3, window_bounds = array<i64: 64, 128>}]} {
    %c0_i32 = arith.constant 0 : i32
    %0 = arith.cmpi eq, %arg2, %c0_i32 : i32
    %1 = arith.extui %0 : i1 to i32
    %c0_i32_0 = arith.constant 0 : i32
    %2 = arith.cmpi ne, %1, %c0_i32_0 : i32
    scf.if %2 {
      %cst_10 = arith.constant 0.000000e+00 : f32
      %12 = vector.broadcast %cst_10 : f32 to vector<64x128xf32>
      %c0_11 = arith.constant 0 : index
      %c0_12 = arith.constant 0 : index
      %13 = vector.load %arg7[%c0_11, %c0_12] : memref<64x128xf32, #tpu.memory_space<vmem>>, vector<64x128xf32>
      tpu.vector_store %arg7[%c0_11, %c0_12], %12 {strides = array<i32>} : memref<64x128xf32, #tpu.memory_space<vmem>>, vector<64x128xf32>,
    } else {
    }
    %c0 = arith.constant 0 : index
    %c0_1 = arith.constant 0 : index
    %3 = vector.load %arg7[%c0, %c0_1] : memref<64x128xf32, #tpu.memory_space<vmem>>, vector<64x128xf32>
    %c0_2 = arith.constant 0 : index
    %c0_3 = arith.constant 0 : index
    %4 = vector.load %arg3[%c0_2, %c0_3] : memref<64x128xbf16, #tpu.memory_space<vmem>>, vector<64x128xbf16>
    %c0_4 = arith.constant 0 : index
    %c0_5 = arith.constant 0 : index
    %5 = vector.load %arg4[%c0_4, %c0_5] : memref<128x128xbf16, #tpu.memory_space<vmem>>, vector<128x128xbf16>
    %cst = arith.constant dense<0.000000e+00> : vector<64x128xf32>
    %6 = tpu.matmul %4, %5, %cst {dimension_numbers = #tpu.dot_dimension_numbers<[1], [0], [0], [1], [0, 0, 1, 1], [], []>} : vector<64x128xbf16>, vector<128x128xbf16>, vector<64x128xf32> -> vector<64x128xf32>
    %7 = arith.addf %3, %6 : vector<64x128xf32>
    %c0_6 = arith.constant 0 : index
    %c0_7 = arith.constant 0 : index
    %8 = vector.load %arg7[%c0_6, %c0_7] : memref<64x128xf32, #tpu.memory_space<vmem>>, vector<64x128xf32>
    tpu.vector_store %arg7[%c0_6, %c0_7], %7 {strides = array<i32>} : memref<64x128xf32, #tpu.memory_space<vmem>>, vector<64x128xf32>,
    %c0_i32_8 = arith.constant 0 : i32
    %9 = arith.cmpi eq, %arg2, %c0_i32_8 : i32
    %10 = arith.extui %9 : i1 to i32
    %c0_i32_9 = arith.constant 0 : i32
    %11 = arith.cmpi ne, %10, %c0_i32_9 : i32
    scf.if %11 {
      %c0_10 = arith.constant 0 : index
      %c0_11 = arith.constant 0 : index
      %12 = vector.load %arg7[%c0_10, %c0_11] : memref<64x128xf32, #tpu.memory_space<vmem>>, vector<64x128xf32>
      %c0_12 = arith.constant 0 : index
      %c0_13 = arith.constant 0 : index
      %13 = vector.load %arg5[%c0_12, %c0_13] : memref<1x128xf32, #tpu.memory_space<vmem>>, vector<1x128xf32>
      %14 = vector.broadcast %13 : vector<1x128xf32> to vector<64x128xf32>
      %15 = arith.addf %12, %14 : vector<64x128xf32>
      %c0_14 = arith.constant 0 : index
      %c0_15 = arith.constant 0 : index
      %16 = vector.load %arg6[%c0_14, %c0_15] : memref<64x128xf32, #tpu.memory_space<vmem>>, vector<64x128xf32>
      tpu.vector_store %arg6[%c0_14, %c0_15], %15 {strides = array<i32>} : memref<64x128xf32, #tpu.memory_space<vmem>>, vector<64x128xf32>,
    } else {
    }
    return
  }
  func.func @transform_0(%arg0: i32, %arg1: i32, %arg2: i32) -> (i32, i32) {
    %c0_i32 = arith.constant 0 : i32
    return %arg0, %arg2 : i32, i32
  }
  func.func @transform_1(%arg0: i32, %arg1: i32, %arg2: i32) -> (i32, i32) {
    %c0_i32 = arith.constant 0 : i32
    return %arg2, %arg1 : i32, i32
  }
  func.func @transform_2(%arg0: i32, %arg1: i32, %arg2: i32) -> (i32, i32) {
    %c0_i32 = arith.constant 0 : i32
    %c0_i32_0 = arith.constant 0 : i32
    return %c0_i32, %arg1 : i32, i32
  }
  func.func @transform_3(%arg0: i32, %arg1: i32, %arg2: i32) -> (i32, i32) {
    %c0_i32 = arith.constant 0 : i32
    return %arg0, %arg1 : i32, i32
  }
}

</mosaic_0001>

<bundles_post_ra>
// kernel: lstm_module_forward.5
= control target key start
LH: loop header
LB: loop body
LE: loop exit
PB: predicated region body
PF: predicated region fallthrough
CT: control target
= control target key end

     0   :  { %s410_s1 = inlined_call_operand.vmem [shape: bf16[128,128], index: 1, kind: input, shape index: {}]   ;;  %s411_s0 = inlined_call_operand.vmem [shape: bf16[64,128], index: 0, kind: input, shape index: {}]   ;;  %s412_s2 = inlined_call_operand.vmem [shape: f32[1,128], index: 2, kind: input, shape index: {}]   ;;  %s413_s3 = inlined_call_operand.vmem [shape: f32[64,128], index: 3, kind: output, shape index: {}]  }
   0x1   :  { %v315_v0 = vld [vmem:[%s410_s1] sm:$0xff]   ;;  %v316_v1 = vld [vmem:[%s410_s1 + $0x8] sm:$0xff]   ;;  %v317_v2 = vld [vmem:[%s410_s1 + $0x10] sm:$0xff]  }
   0x2   :  { %275 = vmatprep.subr.bf16.mxu0 %v315_v0  ;;  %299 = vmatprep.subr.bf16.mxu1 %v315_v0  ;;  %v318_v3 = vld [vmem:[%s410_s1 + $0x18] sm:$0xff]   ;;  %v323_v4 = vld [vmem:[%s411_s0] sm:$0xff]   ;;  %v324_v5 = vld [vmem:[%s411_s0 + $0x10] sm:$0xff]  }
   0x3   :  { %276 = vmatpush3.bf16.msra.mxu0 %v315_v0  ;;  %307 = vmatpush3.bf16.msra.mxu1 %v315_v0  ;;  %v319_v6 = vld [vmem:[%s410_s1 + $0x20] sm:$0xff]   ;;  %v320_v7 = vld [vmem:[%s410_s1 + $0x28] sm:$0xff]   ;;  %v321_v8 = vld [vmem:[%s410_s1 + $0x30] sm:$0xff]  }
   0x4   :  { %277 = vmatprep.subr.bf16.mxu0 %v316_v1  ;;  %300 = vmatprep.subr.bf16.mxu1 %v316_v1  ;;  %v322_v9 = vld [vmem:[%s410_s1 + $0x38] sm:$0xff]   ;;  %v325_v10 = vld [vmem:[%s411_s0 + $0x8] sm:$0xff]   ;;  %v262_v12 = vld [vmem:[%s412_s2] ss:$0 sm:$0xff] }
   0x5   :  { %291 = vmatprep.mubr.bf16.mxu0 %v323_v4  ;;  %295 = vmatprep.mubr.bf16.mxu1 %v324_v5  ;;  %v326_v11 = vld [vmem:[%s411_s0 + $0x18] sm:$0xff]  }
   0x7   :  { %278 = vmatpush3.bf16.msra.mxu0 %v316_v1  ;;  %308 = vmatpush3.bf16.msra.mxu1 %v316_v1 }
   0x8   :  { %279 = vmatprep.subr.bf16.mxu0 %v317_v2  ;;  %301 = vmatprep.subr.bf16.mxu1 %v317_v2 }
   0xb   :  { %280 = vmatpush3.bf16.msra.mxu0 %v317_v2  ;;  %309 = vmatpush3.bf16.msra.mxu1 %v317_v2 }
   0xc   :  { %281 = vmatprep.subr.bf16.mxu0 %v318_v3  ;;  %302 = vmatprep.subr.bf16.mxu1 %v318_v3 }
   0xf   :  { %282 = vmatpush3.bf16.msra.mxu0 %v318_v3  ;;  %310 = vmatpush3.bf16.msra.mxu1 %v318_v3 }
  0x10   :  { %283 = vmatprep.subr.bf16.mxu0 %v319_v6  ;;  %303 = vmatprep.subr.bf16.mxu1 %v319_v6 }
  0x13   :  { %284 = vmatpush3.bf16.msra.mxu0 %v319_v6  ;;  %311 = vmatpush3.bf16.msra.mxu1 %v319_v6 }
  0x14   :  { %285 = vmatprep.subr.bf16.mxu0 %v320_v7  ;;  %304 = vmatprep.subr.bf16.mxu1 %v320_v7 }
  0x17   :  { %286 = vmatpush3.bf16.msra.mxu0 %v320_v7  ;;  %312 = vmatpush3.bf16.msra.mxu1 %v320_v7 }
  0x18   :  { %287 = vmatprep.subr.bf16.mxu0 %v321_v8  ;;  %305 = vmatprep.subr.bf16.mxu1 %v321_v8 }
  0x1b   :  { %288 = vmatpush3.bf16.msra.mxu0 %v321_v8  ;;  %313 = vmatpush3.bf16.msra.mxu1 %v321_v8 }
  0x1c   :  { %289 = vmatprep.subr.bf16.mxu0 %v322_v9  ;;  %306 = vmatprep.subr.bf16.mxu1 %v322_v9 }
  0x1f   :  { %290 = vmatpush3.bf16.msra.mxu0 %v322_v9  ;;  %314 = vmatpush3.bf16.msra.mxu1 %v322_v9 }
  0x22   :  { %292 = vmatmul.mubr.bf16.vlgmr.msra.gmra.mrb[0].mxu0 %v325_v10  ;;  %296 = vmatmul.mubr.bf16.vlgmr.msra.gmra.mrb[0].mxu1 %v326_v11 }
  0xf5   :  { %v293_v13 = vpop.f32.mrb[0].mxu0  ;;  %v297_v14 = vpop.f32.mrb[0].mxu1 }
  0xf6   :  { %v232_v15 = vadd.f32 %v293_v13, %v262_v12  ;;  %v236_v16 = vadd.f32 %v297_v14, %v262_v12  ;;  %v165_v17 = vpop.f32.mrb[1].mxu0  ;;  %v181_v18 = vpop.f32.mrb[1].mxu1 }
  0xf7   :  { %v230_v19 = vadd.f32 %v262_v12, %v165_v17  ;;  %v234_v20 = vadd.f32 %v262_v12, %v181_v18  ;;  %v294_v21 = vpop.f32.mrb[2].mxu0  ;;  %v298_v22 = vpop.f32.mrb[2].mxu1 }
  0xf8   :  { %240 = vst [vmem:[%s413_s3 + $0x10] sm:$0xff] %v232_v15  ;;  %244 = vst [vmem:[%s413_s3 + $0x30] sm:$0xff] %v236_v16  ;;  %v233_v23 = vadd.f32 %v294_v21, %v262_v12  ;;  %v237_v24 = vadd.f32 %v298_v22, %v262_v12  ;;  %v168_v25 = vpop.f32.mrb[3].mxu0  ;;  %v184_v26 = vpop.f32.mrb[3].mxu1 }
  0xf9   :  { %238 = vst [vmem:[%s413_s3] sm:$0xff] %v230_v19  ;;  %242 = vst [vmem:[%s413_s3 + $0x20] sm:$0xff] %v234_v20  ;;  %v231_v27 = vadd.f32 %v262_v12, %v168_v25  ;;  %v235_v28 = vadd.f32 %v262_v12, %v184_v26 }
  0xfa   :  { %241 = vst [vmem:[%s413_s3 + $0x18] sm:$0xff] %v233_v23  ;;  %245 = vst [vmem:[%s413_s3 + $0x38] sm:$0xff] %v237_v24 }
  0xfb   :  { %239 = vst [vmem:[%s413_s3 + $0x8] sm:$0xff] %v231_v27  ;;  %243 = vst [vmem:[%s413_s3 + $0x28] sm:$0xff] %v235_v28 }

// kernel: lstm_module_forward.3
= control target key start
LH: loop header
LB: loop body
LE: loop exit
PB: predicated region body
PF: predicated region fallthrough
CT: control target
= control target key end

     0   :  { %v731_v1 = vmov 0   ;;  %v554_v37 = vlaneseq  ;;  %s1007_s1 = inlined_call_operand.vmem [shape: bf16[128,512], index: 1, kind: input, shape index: {}]   ;;  %s1008_s0 = inlined_call_operand.vmem [shape: bf16[64,128], index: 0, kind: input, shape index: {}]   ;;  %s1009_s2 = inlined_call_operand.vmem [shape: f32[1,512], index: 2, kind: input, shape index: {}]   ;;  %s1010_s3 = inlined_call_operand.vmem [shape: f32[64,512], index: 3, kind: output, shape index: {}]  }
   0x1   :  { %v679_v0 = vld [vmem:[%s1007_s1 + $0x4] ss:$16 sps:$4 sm:$0xff]   ;;  %339 = vmatprep.mubr.bf16.mxu0 %v731_v1  ;;  %412 = vmatprep.mubr.bf16.mxu1 %v731_v1  ;;  %v681_v2 = vld [vmem:[%s1007_s1 + $0xc] ss:$16 sps:$4 sm:$0xff]   ;;  %v683_v3 = vld [vmem:[%s1007_s1] ss:$16 sps:$4 sm:$0xff]  }
   0x2   :  { %307 = vmatprep.subr.bf16.mxu0 %v679_v0  ;;  %v684_v4 = vld [vmem:[%s1007_s1 + $0x8] ss:$16 sps:$4 sm:$0xff]   ;;  %380 = vmatprep.subr.bf16.mxu1 %v681_v2  ;;  %v685_v5 = vld [vmem:[%s1007_s1 + $0x24] ss:$16 sps:$4 sm:$0xff]   ;;  %v687_v6 = vld [vmem:[%s1007_s1 + $0x2c] ss:$16 sps:$4 sm:$0xff]  }
   0x3   :  { %308 = vmatpush1.bf16.msra.mxu0 %v683_v3  ;;  %381 = vmatpush1.bf16.msra.mxu1 %v684_v4  ;;  %v689_v7 = vld [vmem:[%s1007_s1 + $0x20] ss:$16 sps:$4 sm:$0xff]   ;;  %v690_v8 = vld [vmem:[%s1007_s1 + $0x28] ss:$16 sps:$4 sm:$0xff]   ;;  %v691_v9 = vld [vmem:[%s1007_s1 + $0x44] ss:$16 sps:$4 sm:$0xff]  }
   0x4   :  { %309 = vmatprep.subr.bf16.mxu0 %v685_v5  ;;  %382 = vmatprep.subr.bf16.mxu1 %v687_v6  ;;  %v693_v10 = vld [vmem:[%s1007_s1 + $0x4c] ss:$16 sps:$4 sm:$0xff]   ;;  %v695_v11 = vld [vmem:[%s1007_s1 + $0x40] ss:$16 sps:$4 sm:$0xff]   ;;  %v696_v12 = vld [vmem:[%s1007_s1 + $0x48] ss:$16 sps:$4 sm:$0xff]  }
   0x5   :  { %v697_v13 = vld [vmem:[%s1007_s1 + $0x64] ss:$16 sps:$4 sm:$0xff]   ;;  %v699_v14 = vld [vmem:[%s1007_s1 + $0x6c] ss:$16 sps:$4 sm:$0xff]   ;;  %v701_v15 = vld [vmem:[%s1007_s1 + $0x60] ss:$16 sps:$4 sm:$0xff]  }
   0x6   :  { %v702_v16 = vld [vmem:[%s1007_s1 + $0x68] ss:$16 sps:$4 sm:$0xff]   ;;  %v703_v17 = vld [vmem:[%s1007_s1 + $0x84] ss:$16 sps:$4 sm:$0xff]   ;;  %v705_v18 = vld [vmem:[%s1007_s1 + $0x8c] ss:$16 sps:$4 sm:$0xff]  }
   0x7   :  { %310 = vmatpush1.bf16.msra.mxu0 %v689_v7  ;;  %383 = vmatpush1.bf16.msra.mxu1 %v690_v8  ;;  %v707_v19 = vld [vmem:[%s1007_s1 + $0x80] ss:$16 sps:$4 sm:$0xff]   ;;  %v708_v20 = vld [vmem:[%s1007_s1 + $0x88] ss:$16 sps:$4 sm:$0xff]   ;;  %v709_v21 = vld [vmem:[%s1007_s1 + $0xa4] ss:$16 sps:$4 sm:$0xff]  }
   0x8   :  { %311 = vmatprep.subr.bf16.mxu0 %v691_v9  ;;  %384 = vmatprep.subr.bf16.mxu1 %v693_v10  ;;  %v711_v22 = vld [vmem:[%s1007_s1 + $0xac] ss:$16 sps:$4 sm:$0xff]   ;;  %v713_v23 = vld [vmem:[%s1007_s1 + $0xa0] ss:$16 sps:$4 sm:$0xff]   ;;  %v714_v24 = vld [vmem:[%s1007_s1 + $0xa8] ss:$16 sps:$4 sm:$0xff]  }
   0x9   :  { %v715_v25 = vld [vmem:[%s1007_s1 + $0xc4] ss:$16 sps:$4 sm:$0xff]   ;;  %v717_v26 = vld [vmem:[%s1007_s1 + $0xcc] ss:$16 sps:$4 sm:$0xff]   ;;  %v719_v27 = vld [vmem:[%s1007_s1 + $0xc0] ss:$16 sps:$4 sm:$0xff]  }
   0xa   :  { %v720_v28 = vld [vmem:[%s1007_s1 + $0xc8] ss:$16 sps:$4 sm:$0xff]   ;;  %v721_v29 = vld [vmem:[%s1007_s1 + $0xe4] ss:$16 sps:$4 sm:$0xff]   ;;  %v723_v30 = vld [vmem:[%s1007_s1 + $0xec] ss:$16 sps:$4 sm:$0xff]  }
   0xb   :  { %312 = vmatpush1.bf16.msra.mxu0 %v695_v11  ;;  %385 = vmatpush1.bf16.msra.mxu1 %v696_v12  ;;  %v725_v31 = vld [vmem:[%s1007_s1 + $0xe0] ss:$16 sps:$4 sm:$0xff]   ;;  %v726_v32 = vld [vmem:[%s1007_s1 + $0xe8] ss:$16 sps:$4 sm:$0xff]   ;;  %v555_v38 = vshrl.u32 %v554_v37, 7 }
   0xc   :  { %313 = vmatprep.subr.bf16.mxu0 %v697_v13  ;;  %386 = vmatprep.subr.bf16.mxu1 %v699_v14  ;;  %v727_v33 = vld [vmem:[%s1008_s0] sm:$0xff]   ;;  %v728_v34 = vld [vmem:[%s1008_s0 + $0x8] sm:$0xff]   ;;  %v729_v35 = vld [vmem:[%s1008_s0 + $0x10] sm:$0xff]  }
   0xd   :  { %v730_v36 = vld [vmem:[%s1008_s0 + $0x18] sm:$0xff]   ;;  %v556_v39 = vsub.s32 0, %v555_v38  ;;  %v564_v40 = vsub.s32 2, %v555_v38  ;;  %v552_v41 = vld [vmem:[%s1009_s2] sm:$0xf]  ;;  %v560_v42 = vsub.s32 1, %v555_v38 }
   0xe   :  { %v568_v43 = vsub.s32 3, %v555_v38 }
   0xf   :  { %314 = vmatpush1.bf16.msra.mxu0 %v701_v15  ;;  %387 = vmatpush1.bf16.msra.mxu1 %v702_v16  ;;  %v871_v44 = vrot.slane %v552_v41, %v556_v39  ;;  %v873_v45 = vrot.slane %v552_v41, %v564_v40  ;;  %v875_v46 = vrot.slane %v552_v41, %v560_v42 }
  0x10   :  { %315 = vmatprep.subr.bf16.mxu0 %v703_v17  ;;  %388 = vmatprep.subr.bf16.mxu1 %v705_v18  ;;  %v877_v47 = vrot.slane %v552_v41, %v568_v43 }
  0x13   :  { %316 = vmatpush1.bf16.msra.mxu0 %v707_v19  ;;  %389 = vmatpush1.bf16.msra.mxu1 %v708_v20 }
  0x14   :  { %317 = vmatprep.subr.bf16.mxu0 %v709_v21  ;;  %390 = vmatprep.subr.bf16.mxu1 %v711_v22 }
  0x17   :  { %318 = vmatpush1.bf16.msra.mxu0 %v713_v23  ;;  %391 = vmatpush1.bf16.msra.mxu1 %v714_v24 }
  0x18   :  { %319 = vmatprep.subr.bf16.mxu0 %v715_v25  ;;  %392 = vmatprep.subr.bf16.mxu1 %v717_v26 }
  0x1b   :  { %320 = vmatpush1.bf16.msra.mxu0 %v719_v27  ;;  %393 = vmatpush1.bf16.msra.mxu1 %v720_v28 }
  0x1c   :  { %321 = vmatprep.subr.bf16.mxu0 %v721_v29  ;;  %394 = vmatprep.subr.bf16.mxu1 %v723_v30 }
  0x1f   :  { %322 = vmatpush1.bf16.msra.mxu0 %v725_v31  ;;  %395 = vmatpush1.bf16.msra.mxu1 %v726_v32 }
  0x22   :  { %340 = vmatmul.mubr.bf16.vlgmr.msra.gmra.mrb[0].mxu0 %v727_v33  ;;  %413 = vmatmul.mubr.bf16.vlgmr.msra.gmra.mrb[0].mxu1 %v727_v33 }
  0x23   :  { %349 = vmatprep.mubr.bf16.mxu0 %v731_v1  ;;  %422 = vmatprep.mubr.bf16.mxu1 %v731_v1 }
  0x2a   :  { %350 = vmatmul.mubr.bf16.gmra.mrb[4].mxu0 %v728_v34  ;;  %423 = vmatmul.mubr.bf16.gmra.mrb[4].mxu1 %v728_v34 }
  0x2b   :  { %359 = vmatprep.mubr.bf16.mxu0 %v731_v1  ;;  %432 = vmatprep.mubr.bf16.mxu1 %v731_v1 }
  0x32   :  { %360 = vmatmul.mubr.bf16.gmra.mrb[8].mxu0 %v729_v35  ;;  %433 = vmatmul.mubr.bf16.gmra.mrb[8].mxu1 %v729_v35 }
  0x33   :  { %369 = vmatprep.mubr.bf16.mxu0 %v731_v1  ;;  %442 = vmatprep.mubr.bf16.mxu1 %v731_v1 }
  0x3a   :  { %370 = vmatmul.mubr.bf16.gmra.mrb[12].mxu0 %v730_v36  ;;  %443 = vmatmul.mubr.bf16.gmra.mrb[12].mxu1 %v730_v36 }
  0xf5   :  { %v341_v48 = vpop.f32.mrb[0].mxu0  ;;  %v414_v49 = vpop.f32.mrb[0].mxu1 }
  0xf6   :  { %v574_v50 = vadd.f32 %v871_v44, %v341_v48  ;;  %v576_v51 = vadd.f32 %v873_v45, %v414_v49  ;;  %v343_v52 = vpop.f32.mrb[1].mxu0  ;;  %v416_v53 = vpop.f32.mrb[1].mxu1 }
  0xf7   :  { %v575_v54 = vadd.f32 %v875_v46, %v343_v52  ;;  %v577_v55 = vadd.f32 %v877_v47, %v416_v53  ;;  %v345_v56 = vpop.f32.mrb[2].mxu0  ;;  %v418_v57 = vpop.f32.mrb[2].mxu1 }
  0xf8   :  { %606 = vst [vmem:[%s1010_s3] sm:$0xff] %v574_v50  ;;  %608 = vst [vmem:[%s1010_s3 + $0x10] sm:$0xff] %v576_v51  ;;  %v578_v58 = vadd.f32 %v871_v44, %v345_v56  ;;  %v580_v59 = vadd.f32 %v873_v45, %v418_v57  ;;  %v347_v60 = vpop.f32.mrb[3].mxu0  ;;  %v420_v61 = vpop.f32.mrb[3].mxu1 }
  0xf9   :  { %607 = vst [vmem:[%s1010_s3 + $0x8] sm:$0xff] %v575_v54  ;;  %609 = vst [vmem:[%s1010_s3 + $0x18] sm:$0xff] %v577_v55  ;;  %v579_v62 = vadd.f32 %v875_v46, %v347_v60  ;;  %v581_v63 = vadd.f32 %v877_v47, %v420_v61 }
  0xfa   :  { %610 = vst [vmem:[%s1010_s3 + $0x20] sm:$0xff] %v578_v58  ;;  %612 = vst [vmem:[%s1010_s3 + $0x30] sm:$0xff] %v580_v59 }
  0xfb   :  { %611 = vst [vmem:[%s1010_s3 + $0x28] sm:$0xff] %v579_v62  ;;  %613 = vst [vmem:[%s1010_s3 + $0x38] sm:$0xff] %v581_v63 }
  0xfd   :  { %v351_v0 = vpop.f32.mrb[4].mxu0  ;;  %v424_v1 = vpop.f32.mrb[4].mxu1 }
  0xfe   :  { %v582_v2 = vadd.f32 %v871_v44, %v351_v0  ;;  %v584_v3 = vadd.f32 %v873_v45, %v424_v1  ;;  %v353_v4 = vpop.f32.mrb[5].mxu0  ;;  %v426_v5 = vpop.f32.mrb[5].mxu1 }
  0xff   :  { %v583_v6 = vadd.f32 %v875_v46, %v353_v4  ;;  %v585_v7 = vadd.f32 %v877_v47, %v426_v5  ;;  %v355_v8 = vpop.f32.mrb[6].mxu0  ;;  %v428_v9 = vpop.f32.mrb[6].mxu1 }
 0x100   :  { %614 = vst [vmem:[%s1010_s3 + $0x40] sm:$0xff] %v582_v2  ;;  %616 = vst [vmem:[%s1010_s3 + $0x50] sm:$0xff] %v584_v3  ;;  %v586_v10 = vadd.f32 %v871_v44, %v355_v8  ;;  %v588_v11 = vadd.f32 %v873_v45, %v428_v9  ;;  %v357_v12 = vpop.f32.mrb[7].mxu0  ;;  %v430_v13 = vpop.f32.mrb[7].mxu1 }
 0x101   :  { %615 = vst [vmem:[%s1010_s3 + $0x48] sm:$0xff] %v583_v6  ;;  %617 = vst [vmem:[%s1010_s3 + $0x58] sm:$0xff] %v585_v7  ;;  %v587_v14 = vadd.f32 %v875_v46, %v357_v12  ;;  %v589_v15 = vadd.f32 %v877_v47, %v430_v13 }
 0x102   :  { %618 = vst [vmem:[%s1010_s3 + $0x60] sm:$0xff] %v586_v10  ;;  %620 = vst [vmem:[%s1010_s3 + $0x70] sm:$0xff] %v588_v11 }
 0x103   :  { %619 = vst [vmem:[%s1010_s3 + $0x68] sm:$0xff] %v587_v14  ;;  %621 = vst [vmem:[%s1010_s3 + $0x78] sm:$0xff] %v589_v15 }
 0x105   :  { %v361_v16 = vpop.f32.mrb[8].mxu0  ;;  %v434_v17 = vpop.f32.mrb[8].mxu1 }
 0x106   :  { %v590_v18 = vadd.f32 %v871_v44, %v361_v16  ;;  %v592_v19 = vadd.f32 %v873_v45, %v434_v17  ;;  %v363_v20 = vpop.f32.mrb[9].mxu0  ;;  %v436_v21 = vpop.f32.mrb[9].mxu1 }
 0x107   :  { %v591_v22 = vadd.f32 %v875_v46, %v363_v20  ;;  %v593_v23 = vadd.f32 %v877_v47, %v436_v21  ;;  %v365_v24 = vpop.f32.mrb[10].mxu0  ;;  %v438_v25 = vpop.f32.mrb[10].mxu1 }
 0x108   :  { %622 = vst [vmem:[%s1010_s3 + $0x80] sm:$0xff] %v590_v18  ;;  %624 = vst [vmem:[%s1010_s3 + $0x90] sm:$0xff] %v592_v19  ;;  %v594_v26 = vadd.f32 %v871_v44, %v365_v24  ;;  %v596_v27 = vadd.f32 %v873_v45, %v438_v25  ;;  %v367_v28 = vpop.f32.mrb[11].mxu0  ;;  %v440_v29 = vpop.f32.mrb[11].mxu1 }
 0x109   :  { %623 = vst [vmem:[%s1010_s3 + $0x88] sm:$0xff] %v591_v22  ;;  %625 = vst [vmem:[%s1010_s3 + $0x98] sm:$0xff] %v593_v23  ;;  %v595_v30 = vadd.f32 %v875_v46, %v367_v28  ;;  %v597_v31 = vadd.f32 %v877_v47, %v440_v29 }
 0x10a   :  { %626 = vst [vmem:[%s1010_s3 + $0xa0] sm:$0xff] %v594_v26  ;;  %628 = vst [vmem:[%s1010_s3 + $0xb0] sm:$0xff] %v596_v27 }
 0x10b   :  { %627 = vst [vmem:[%s1010_s3 + $0xa8] sm:$0xff] %v595_v30  ;;  %629 = vst [vmem:[%s1010_s3 + $0xb8] sm:$0xff] %v597_v31 }
 0x10d   :  { %v371_v32 = vpop.f32.mrb[12].mxu0  ;;  %v444_v33 = vpop.f32.mrb[12].mxu1 }
 0x10e   :  { %v598_v34 = vadd.f32 %v871_v44, %v371_v32  ;;  %v600_v35 = vadd.f32 %v873_v45, %v444_v33  ;;  %v373_v36 = vpop.f32.mrb[13].mxu0  ;;  %v446_v37 = vpop.f32.mrb[13].mxu1 }
 0x10f   :  { %v599_v38 = vadd.f32 %v875_v46, %v373_v36  ;;  %v601_v39 = vadd.f32 %v877_v47, %v446_v37  ;;  %v375_v40 = vpop.f32.mrb[14].mxu0  ;;  %v448_v41 = vpop.f32.mrb[14].mxu1 }
 0x110   :  { %630 = vst [vmem:[%s1010_s3 + $0xc0] sm:$0xff] %v598_v34  ;;  %632 = vst [vmem:[%s1010_s3 + $0xd0] sm:$0xff] %v600_v35  ;;  %v602_v42 = vadd.f32 %v871_v44, %v375_v40  ;;  %v604_v43 = vadd.f32 %v873_v45, %v448_v41  ;;  %v377_v48 = vpop.f32.mrb[15].mxu0  ;;  %v450_v49 = vpop.f32.mrb[15].mxu1 }
 0x111   :  { %631 = vst [vmem:[%s1010_s3 + $0xc8] sm:$0xff] %v599_v38  ;;  %633 = vst [vmem:[%s1010_s3 + $0xd8] sm:$0xff] %v601_v39  ;;  %v603_v50 = vadd.f32 %v875_v46, %v377_v48  ;;  %v605_v51 = vadd.f32 %v877_v47, %v450_v49 }
 0x112   :  { %634 = vst [vmem:[%s1010_s3 + $0xe0] sm:$0xff] %v602_v42  ;;  %636 = vst [vmem:[%s1010_s3 + $0xf0] sm:$0xff] %v604_v43 }
 0x113   :  { %635 = vst [vmem:[%s1010_s3 + $0xe8] sm:$0xff] %v603_v50  ;;  %637 = vst [vmem:[%s1010_s3 + $0xf8] sm:$0xff] %v605_v51 }

// kernel: lstm_module_forward.4
= control target key start
LH: loop header
LB: loop body
LE: loop exit
PB: predicated region body
PF: predicated region fallthrough
CT: control target
= control target key end

     0   :  { %v1662_v1 = vmov 0   ;;  %v1663_v27 = vmov 0.0   ;;  %v1664_v40 = vmov 0.0|0.0   ;;  %s2534_s1 = inlined_call_operand.vmem [shape: bf16[128,512], index: 1, kind: input, shape index: {}]   ;;  %s2535_s2 = inlined_call_operand.vmem [shape: s32[8,1], index: 2, kind: input, shape index: {}]   ;;  %s2536_s0 = inlined_call_operand.vmem [shape: f32[8,8,512], index: 0, kind: input, shape index: {}]   ;;  %s2537_s3 = inlined_call_operand.vmem [shape: f32[8,8,128], index: 3, kind: output, shape index: {0}]   ;;  %s2538_s5 = inlined_call_operand.vmem [shape: f32[8,128], index: 5, kind: output, shape index: {2}]   ;;  %s2539_s4 = inlined_call_operand.vmem [shape: f32[8,128], index: 4, kind: output, shape index: {1}]  }
   0x1   :  { %v1698_v0 = vld [vmem:[%s2534_s1 + $0x4] ss:$16 sps:$4 sm:$0xff]   ;;  %257 = vmatprep.mubr.bf16.mxu0 %v1662_v1  ;;  %298 = vmatprep.mubr.bf16.mxu1 %v1662_v1  ;;  %v1705_v2 = vld [vmem:[%s2534_s1] ss:$16 sps:$4 sm:$0xff]   ;;  %v1730_v6 = vld [vmem:[%s2534_s1 + $0xc] ss:$16 sps:$4 sm:$0xff]  }
   0x2   :  { %1452 = vset.pattern.permute.xlu0 %v1662_v1  ;;  %1453 = vset.pattern.permute.xlu1 %v1662_v1  ;;  %v1713_v3 = vld [vmem:[%s2534_s1 + $0x24] ss:$16 sps:$4 sm:$0xff]   ;;  %v1719_v4 = vld [vmem:[%s2534_s1 + $0x20] ss:$16 sps:$4 sm:$0xff]   ;;  %v1735_v7 = vld [vmem:[%s2534_s1 + $0x8] ss:$16 sps:$4 sm:$0xff]  }
   0x3   :  { %225 = vmatprep.subr.bf16.mxu0 %v1698_v0  ;;  %v1725_v5 = vld [vmem:[%s2534_s1 + $0x44] ss:$16 sps:$4 sm:$0xff]   ;;  %v1741_v8 = vld [vmem:[%s2534_s1 + $0x40] ss:$16 sps:$4 sm:$0xff]   ;;  %266 = vmatprep.subr.bf16.mxu1 %v1730_v6  ;;  %v1754_v10 = vld [vmem:[%s2534_s1 + $0x2c] ss:$16 sps:$4 sm:$0xff]  }
   0x4   :  { %226 = vmatpush1.bf16.msra.mxu0 %v1705_v2  ;;  %v1748_v9 = vld [vmem:[%s2534_s1 + $0x64] ss:$16 sps:$4 sm:$0xff]   ;;  %267 = vmatpush1.bf16.msra.mxu1 %v1735_v7  ;;  %v1759_v11 = vld [vmem:[%s2534_s1 + $0x28] ss:$16 sps:$4 sm:$0xff]   ;;  %v1766_v12 = vld [vmem:[%s2534_s1 + $0x60] ss:$16 sps:$4 sm:$0xff]  }
   0x5   :  { %227 = vmatprep.subr.bf16.mxu0 %v1713_v3  ;;  %268 = vmatprep.subr.bf16.mxu1 %v1754_v10  ;;  %v1771_v13 = vld [vmem:[%s2534_s1 + $0x84] ss:$16 sps:$4 sm:$0xff]   ;;  %v1776_v14 = vld [vmem:[%s2534_s1 + $0x4c] ss:$16 sps:$4 sm:$0xff]   ;;  %v1783_v15 = vld [vmem:[%s2534_s1 + $0x48] ss:$16 sps:$4 sm:$0xff]  }
   0x6   :  { %v1789_v16 = vld [vmem:[%s2534_s1 + $0x6c] ss:$16 sps:$4 sm:$0xff]   ;;  %v1795_v17 = vld [vmem:[%s2534_s1 + $0x80] ss:$16 sps:$4 sm:$0xff]   ;;  %v1801_v18 = vld [vmem:[%s2534_s1 + $0xa4] ss:$16 sps:$4 sm:$0xff]  }
   0x7   :  { %v1807_v19 = vld [vmem:[%s2534_s1 + $0x68] ss:$16 sps:$4 sm:$0xff]   ;;  %v1813_v20 = vld [vmem:[%s2534_s1 + $0x8c] ss:$16 sps:$4 sm:$0xff]   ;;  %v1819_v21 = vld [vmem:[%s2534_s1 + $0xa0] ss:$16 sps:$4 sm:$0xff]  }
   0x8   :  { %228 = vmatpush1.bf16.msra.mxu0 %v1719_v4  ;;  %269 = vmatpush1.bf16.msra.mxu1 %v1759_v11  ;;  %v1824_v22 = vld [vmem:[%s2534_s1 + $0xc4] ss:$16 sps:$4 sm:$0xff]   ;;  %v1831_v23 = vld [vmem:[%s2534_s1 + $0x88] ss:$16 sps:$4 sm:$0xff]   ;;  %v1837_v24 = vld [vmem:[%s2534_s1 + $0xac] ss:$16 sps:$4 sm:$0xff]  }
   0x9   :  { %229 = vmatprep.subr.bf16.mxu0 %v1725_v5  ;;  %270 = vmatprep.subr.bf16.mxu1 %v1776_v14  ;;  %v1842_v25 = vld [vmem:[%s2535_s2] sm:$0xff]  ;;  %v1862_v30 = vld [vmem:[%s2534_s1 + $0xa8] ss:$16 sps:$4 sm:$0xff]   ;;  %v1868_v31 = vld [vmem:[%s2534_s1 + $0xcc] ss:$16 sps:$4 sm:$0xff]  }
   0xa   :  { %vm336_vm0 = vcmp.gt.s32.totalorder %v1842_v25, 0  ;;  %v1849_v26 = vld [vmem:[%s2534_s1 + $0xc0] ss:$16 sps:$4 sm:$0xff]   ;;  %v1856_v29 = vld [vmem:[%s2534_s1 + $0xe4] ss:$16 sps:$4 sm:$0xff]   ;;  %vm475_vm1 = vcmp.gt.s32.totalorder %v1842_v25, 1 }
   0xb   :  { %v1386_v28 = vsel %vm336_vm0, 1.0, %v1663_v27  ;;  %v1394_v33 = vsel %vm475_vm1, 1.0, %v1663_v27  ;;  %v1876_v34 = vld [vmem:[%s2534_s1 + $0xe0] ss:$16 sps:$4 sm:$0xff]   ;;  %vm615_vm2 = vcmp.gt.s32.totalorder %v1842_v25, 2  ;;  %vm755_vm3 = vcmp.gt.s32.totalorder %v1842_v25, 3 }
   0xc   :  { %230 = vmatpush1.bf16.msra.mxu0 %v1741_v8  ;;  %271 = vmatpush1.bf16.msra.mxu1 %v1783_v15  ;;  %v346_v32 = vsub.f32 1.0, %v1386_v28  ;;  %v486_v35 = vsub.f32 1.0, %v1394_v33  ;;  %v1884_v36 = vld [vmem:[%s2534_s1 + $0xc8] ss:$16 sps:$4 sm:$0xff]   ;;  %v1890_v37 = vld [vmem:[%s2534_s1 + $0xec] ss:$16 sps:$4 sm:$0xff]  }
   0xd   :  { %231 = vmatprep.subr.bf16.mxu0 %v1748_v9  ;;  %272 = vmatprep.subr.bf16.mxu1 %v1789_v16  ;;  %v1403_v38 = vsel %vm615_vm2, 1.0, %v1663_v27  ;;  %v1899_v39 = vld [vmem:[%s2534_s1 + $0xe8] ss:$16 sps:$4 sm:$0xff]   ;;  %v1412_v42 = vsel %vm755_vm3, 1.0, %v1663_v27  ;;  %vm895_vm4 = vcmp.gt.s32.totalorder %v1842_v25, 4  ;;  %vm1035_vm5 = vcmp.gt.s32.totalorder %v1842_v25, 5 }
   0xe   :  { %341 = vperm.xlu0 %1452, %v1386_v28   ;;  %480 = vperm.xlu1 %1453, %v1394_v33   ;;  %v626_v41 = vsub.f32 1.0, %v1403_v38  ;;  %v766_v43 = vsub.f32 1.0, %v1412_v42  ;;  %v1421_v44 = vsel %vm895_vm4, 1.0, %v1663_v27  ;;  %v1430_v46 = vsel %vm1035_vm5, 1.0, %v1663_v27  ;;  %v60_v52 = vld [vmem:[%s2536_s0] sm:$0xff]  ;;  %v61_v53 = vld [vmem:[%s2536_s0 + $0x8] sm:$0xff] }
   0xf   :  { %v906_v45 = vsub.f32 1.0, %v1421_v44  ;;  %vm1175_vm6 = vcmp.gt.s32.totalorder %v1842_v25, 6  ;;  %v1046_v47 = vsub.f32 1.0, %v1430_v46  ;;  %vm1315_vm7 = vcmp.gt.s32.totalorder %v1842_v25, 7  ;;  %v63_v62 = vld [vmem:[%s2536_s0 + $0x18] sm:$0xff]  ;;  %v62_v33 = vld [vmem:[%s2536_s0 + $0x10] sm:$0xff] }
  0x10   :  { %232 = vmatpush1.bf16.msra.mxu0 %v1766_v12  ;;  %273 = vmatpush1.bf16.msra.mxu1 %v1807_v19  ;;  %v1439_v48 = vsel %vm1175_vm6, 1.0, %v1663_v27  ;;  %v1448_v50 = vsel %vm1315_vm7, 1.0, %v1663_v27 }
  0x11   :  { %233 = vmatprep.subr.bf16.mxu0 %v1771_v13  ;;  %274 = vmatprep.subr.bf16.mxu1 %v1813_v20  ;;  %v1186_v49 = vsub.f32 1.0, %v1439_v48  ;;  %v1326_v51 = vsub.f32 1.0, %v1448_v50 }
  0x12   :  { %349 = vperm.xlu0 %1452, %v346_v32   ;;  %489 = vperm.xlu1 %1453, %v486_v35  }
  0x14   :  { %234 = vmatpush1.bf16.msra.mxu0 %v1795_v17  ;;  %275 = vmatpush1.bf16.msra.mxu1 %v1831_v23 }
  0x15   :  { %235 = vmatprep.subr.bf16.mxu0 %v1801_v18  ;;  %276 = vmatprep.subr.bf16.mxu1 %v1837_v24 }
  0x16   :  { %620 = vperm.xlu0 %1452, %v1403_v38   ;;  %629 = vperm.xlu1 %1453, %v626_v41  }
  0x18   :  { %236 = vmatpush1.bf16.msra.mxu0 %v1819_v21  ;;  %277 = vmatpush1.bf16.msra.mxu1 %v1862_v30 }
  0x19   :  { %237 = vmatprep.subr.bf16.mxu0 %v1824_v22  ;;  %278 = vmatprep.subr.bf16.mxu1 %v1868_v31 }
  0x1a   :  { %760 = vperm.xlu0 %1452, %v1412_v42   ;;  %769 = vperm.xlu1 %1453, %v766_v43  }
  0x1c   :  { %238 = vmatpush1.bf16.msra.mxu0 %v1849_v26  ;;  %279 = vmatpush1.bf16.msra.mxu1 %v1884_v36 }
  0x1d   :  { %239 = vmatprep.subr.bf16.mxu0 %v1856_v29  ;;  %280 = vmatprep.subr.bf16.mxu1 %v1890_v37 }
  0x1e   :  { %900 = vperm.xlu0 %1452, %v1421_v44   ;;  %909 = vperm.xlu1 %1453, %v906_v45  }
  0x20   :  { %240 = vmatpush1.bf16.msra.mxu0 %v1876_v34  ;;  %281 = vmatpush1.bf16.msra.mxu1 %v1899_v39 }
  0x21   :  { %363 = vmatprep.subr.bf16.mxu0 %v1698_v0  ;;  %404 = vmatprep.subr.bf16.mxu1 %v1730_v6 }
  0x22   :  { %1040 = vperm.xlu0 %1452, %v1430_v46   ;;  %1049 = vperm.xlu1 %1453, %v1046_v47  }
  0x23   :  { %258 = vmatmul.mubr.bf16.vlgmr.msra.gmra.mrb[0].mxu0 %v1664_v40  ;;  %299 = vmatmul.mubr.bf16.vlgmr.msra.gmra.mrb[0].mxu1 %v1664_v40 }
  0x24   :  { %364 = vmatpush1.bf16.msra.mxu0 %v1705_v2  ;;  %395 = vmatprep.mubr.bf16.mxu0 %v1662_v1 }
  0x25   :  { %365 = vmatprep.subr.bf16.mxu0 %v1713_v3  ;;  %405 = vmatpush1.bf16.msra.mxu1 %v1735_v7 }
  0x26   :  { %406 = vmatprep.subr.bf16.mxu1 %v1754_v10  ;;  %436 = vmatprep.mubr.bf16.mxu1 %v1662_v1 }
  0x27   :  { %1180 = vperm.xlu0 %1452, %v1439_v48   ;;  %1189 = vperm.xlu1 %1453, %v1186_v49  }
  0x28   :  { %366 = vmatpush1.bf16.msra.mxu0 %v1719_v4 }
  0x29   :  { %367 = vmatprep.subr.bf16.mxu0 %v1725_v5  ;;  %407 = vmatpush1.bf16.msra.mxu1 %v1759_v11 }
  0x2a   :  { %408 = vmatprep.subr.bf16.mxu1 %v1776_v14 }
  0x2b   :  { %1320 = vperm.xlu0 %1452, %v1448_v50   ;;  %1329 = vperm.xlu1 %1453, %v1326_v51  }
  0x2c   :  { %368 = vmatpush1.bf16.msra.mxu0 %v1741_v8 }
  0x2d   :  { %369 = vmatprep.subr.bf16.mxu0 %v1748_v9  ;;  %409 = vmatpush1.bf16.msra.mxu1 %v1783_v15 }
  0x2e   :  { %410 = vmatprep.subr.bf16.mxu1 %v1789_v16 }
  0x30   :  { %370 = vmatpush1.bf16.msra.mxu0 %v1766_v12 }
  0x31   :  { %371 = vmatprep.subr.bf16.mxu0 %v1771_v13  ;;  %411 = vmatpush1.bf16.msra.mxu1 %v1807_v19 }
  0x32   :  { %412 = vmatprep.subr.bf16.mxu1 %v1813_v20 }
  0x34   :  { %372 = vmatpush1.bf16.msra.mxu0 %v1795_v17 }
  0x35   :  { %373 = vmatprep.subr.bf16.mxu0 %v1801_v18  ;;  %413 = vmatpush1.bf16.msra.mxu1 %v1831_v23 }
  0x36   :  { %414 = vmatprep.subr.bf16.mxu1 %v1837_v24 }
  0x38   :  { %374 = vmatpush1.bf16.msra.mxu0 %v1819_v21 }
  0x39   :  { %375 = vmatprep.subr.bf16.mxu0 %v1824_v22  ;;  %415 = vmatpush1.bf16.msra.mxu1 %v1862_v30 }
  0x3a   :  { %416 = vmatprep.subr.bf16.mxu1 %v1868_v31 }
  0x3c   :  { %376 = vmatpush1.bf16.msra.mxu0 %v1849_v26 }
  0x3d   :  { %377 = vmatprep.subr.bf16.mxu0 %v1856_v29  ;;  %417 = vmatpush1.bf16.msra.mxu1 %v1884_v36 }
  0x3e   :  { %418 = vmatprep.subr.bf16.mxu1 %v1890_v37 }
  0x40   :  { %378 = vmatpush1.bf16.msra.mxu0 %v1876_v34 }
  0x41   :  { %503 = vmatprep.subr.bf16.mxu0 %v1698_v0  ;;  %419 = vmatpush1.bf16.msra.mxu1 %v1899_v39 }
  0x42   :  { %544 = vmatprep.subr.bf16.mxu1 %v1730_v6 }
  0x8d   :  { %v342_v45 = vpop.permute.xlu0 %341 }
  0xf6   :  { %v259_v54 = vpop.f32.mrb[0].mxu0  ;;  %v300_v63 = vpop.f32.mrb[0].mxu1 }
  0xf7   :  { %v307_v55 = vadd.f32 %v259_v54, %v60_v52  ;;  %v261_v56 = vpop.f32.mrb[1].mxu0  ;;  %v302_v25 = vpop.f32.mrb[1].mxu1  ;;  %v309_v38 = vadd.f32 %v300_v63, %v62_v33  ;;  %v1387_v63 = vld [vmem:[%s2536_s0 + $0x20] sm:$0xff] }
  0xf8   :  { %v308_v57 = vadd.f32 %v261_v56, %v61_v53  ;;  %v263_v58 = vpop.f32.mrb[2].mxu0  ;;  %v310_v27 = vadd.f32 %v302_v25, %v63_v62  ;;  %v304_v28 = vpop.f32.mrb[2].mxu1  ;;  %v1388_v25 = vld [vmem:[%s2536_s0 + $0x28] sm:$0xff] }
  0xf9   :  { %v1383_v59 = vmul.f32 -1.442695, %v307_v55  ;;  %v264_v60 = vpop.f32.mrb[3].mxu0  ;;  %v305_v32 = vpop.f32.mrb[3].mxu1 }
  0xfa   :  { %v1384_v61 = vmul.f32 -1.442695, %v308_v57  ;;  %v1385_v35 = vmul.f32 -1.442695, %v310_v27  ;;  %v350_v52 = vpop.permute.xlu0 %349 }
  0xfb   :  { %1502 = vpow2.f32 %v1383_v59  ;;  %v352_v54 = vmul.f32 0.0, %v350_v52 }
  0xfc   :  { %1504 = vpow2.f32 %v1384_v61 }
  0xfd   :  { %1506 = vpow2.f32 %v1385_v35 }
  0xfe   :  { %1508 = vtanh.f32 %v309_v38 }
 0x105   :  { %v1503_v40 = vpop.eup %1502 }
 0x106   :  { %v1505_v41 = vpop.eup %1504  ;;  %v314_v42 = vadd.f32 1.0, %v1503_v40 }
 0x107   :  { %v320_v43 = vadd.f32 1.0, %v1505_v41  ;;  %v1507_v44 = vpop.eup %1506 }
 0x108   :  { %1510 = vrcp.f32 %v314_v42  ;;  %v1509_v46 = vpop.eup %1508  ;;  %v327_v48 = vadd.f32 1.0, %v1507_v44 }
 0x109   :  { %1512 = vrcp.f32 %v320_v43 }
 0x10a   :  { %1514 = vrcp.f32 %v327_v48  ;;  %v1389_v48 = vld [vmem:[%s2536_s0 + $0x30] sm:$0xff] }
 0x112   :  { %v1511_v47 = vpop.eup %1510 }
 0x113   :  { %v1513_v49 = vpop.eup %1512  ;;  %v331_v50 = vmul.f32 %v1511_v47, %v1509_v46  ;;  %v1390_v46 = vld [vmem:[%s2536_s0 + $0x38] sm:$0xff] }
 0x114   :  { %v330_v51 = vmul.f32 0.0, %v1513_v49  ;;  %v1515_v57 = vpop.eup %1514 }
 0x116   :  { %v332_v53 = vadd.f32 %v331_v50, %v330_v51 }
 0x118   :  { %1516 = vtanh.f32 %v332_v53  ;;  %v354_v55 = vmul.f32 %v342_v45, %v332_v53 }
 0x11a   :  { %v1960_v56 = vadd.f32 %v354_v55, %v352_v54 }
 0x122   :  { %v1517_v58 = vpop.eup %1516 }
 0x123   :  { %v334_v59 = vmul.f32 %v1517_v58, %v1515_v57 }
 0x125   :  { %v344_v60 = vmul.f32 %v342_v45, %v334_v59 }
 0x127   :  { %345 = vst [vmem:[%s2537_s3] sm:$0xff] %v344_v60  ;;  %v1965_v61 = vadd.f32 %v352_v54, %v344_v60 }
 0x129   :  { %v362_v62 = vpack.c.bf16 %v1965_v61, %v1965_v61 }
 0x12b   :  { %396 = vmatmul.mubr.bf16.vlgmr.msra.gmra.mrb[4].mxu0 %v362_v62  ;;  %437 = vmatmul.mubr.bf16.vlgmr.msra.gmra.mrb[4].mxu1 %v362_v62 }
 0x12c   :  { %504 = vmatpush1.bf16.msra.mxu0 %v1705_v2  ;;  %545 = vmatpush1.bf16.msra.mxu1 %v1735_v7 }
 0x12d   :  { %505 = vmatprep.subr.bf16.mxu0 %v1713_v3  ;;  %546 = vmatprep.subr.bf16.mxu1 %v1754_v10 }
 0x12e   :  { %535 = vmatprep.mubr.bf16.mxu0 %v1662_v1  ;;  %576 = vmatprep.mubr.bf16.mxu1 %v1662_v1 }
 0x130   :  { %506 = vmatpush1.bf16.msra.mxu0 %v1719_v4  ;;  %547 = vmatpush1.bf16.msra.mxu1 %v1759_v11 }
 0x131   :  { %507 = vmatprep.subr.bf16.mxu0 %v1725_v5  ;;  %548 = vmatprep.subr.bf16.mxu1 %v1776_v14 }
 0x134   :  { %508 = vmatpush1.bf16.msra.mxu0 %v1741_v8  ;;  %549 = vmatpush1.bf16.msra.mxu1 %v1783_v15 }
 0x135   :  { %509 = vmatprep.subr.bf16.mxu0 %v1748_v9  ;;  %550 = vmatprep.subr.bf16.mxu1 %v1789_v16 }
 0x138   :  { %510 = vmatpush1.bf16.msra.mxu0 %v1766_v12  ;;  %551 = vmatpush1.bf16.msra.mxu1 %v1807_v19 }
 0x139   :  { %511 = vmatprep.subr.bf16.mxu0 %v1771_v13  ;;  %552 = vmatprep.subr.bf16.mxu1 %v1813_v20 }
 0x13c   :  { %512 = vmatpush1.bf16.msra.mxu0 %v1795_v17  ;;  %553 = vmatpush1.bf16.msra.mxu1 %v1831_v23 }
 0x13d   :  { %513 = vmatprep.subr.bf16.mxu0 %v1801_v18  ;;  %554 = vmatprep.subr.bf16.mxu1 %v1837_v24 }
 0x140   :  { %514 = vmatpush1.bf16.msra.mxu0 %v1819_v21  ;;  %555 = vmatpush1.bf16.msra.mxu1 %v1862_v30 }
 0x141   :  { %515 = vmatprep.subr.bf16.mxu0 %v1824_v22  ;;  %556 = vmatprep.subr.bf16.mxu1 %v1868_v31 }
 0x144   :  { %516 = vmatpush1.bf16.msra.mxu0 %v1849_v26  ;;  %557 = vmatpush1.bf16.msra.mxu1 %v1884_v36 }
 0x145   :  { %517 = vmatprep.subr.bf16.mxu0 %v1856_v29  ;;  %558 = vmatprep.subr.bf16.mxu1 %v1890_v37 }
 0x148   :  { %518 = vmatpush1.bf16.msra.mxu0 %v1876_v34  ;;  %559 = vmatpush1.bf16.msra.mxu1 %v1899_v39 }
 0x149   :  { %643 = vmatprep.subr.bf16.mxu0 %v1698_v0  ;;  %684 = vmatprep.subr.bf16.mxu1 %v1730_v6 }
 0x1fe   :  { %v397_v27 = vpop.f32.mrb[4].mxu0  ;;  %v438_v28 = vpop.f32.mrb[4].mxu1 }
 0x1ff   :  { %v445_v32 = vadd.f32 %v1387_v63, %v397_v27  ;;  %v399_v33 = vpop.f32.mrb[5].mxu0  ;;  %v440_v35 = vpop.f32.mrb[5].mxu1  ;;  %v447_v50 = vadd.f32 %v1389_v48, %v438_v28 }
 0x200   :  { %v446_v38 = vadd.f32 %v1388_v25, %v399_v33  ;;  %v401_v40 = vpop.f32.mrb[6].mxu0  ;;  %v442_v41 = vpop.f32.mrb[6].mxu1  ;;  %v448_v47 = vadd.f32 %v1390_v46, %v440_v35 }
 0x201   :  { %v1391_v42 = vmul.f32 -1.442695, %v445_v32  ;;  %v402_v43 = vpop.f32.mrb[7].mxu0  ;;  %v443_v44 = vpop.f32.mrb[7].mxu1 }
 0x202   :  { %v1392_v45 = vmul.f32 -1.442695, %v446_v38  ;;  %v1393_v49 = vmul.f32 -1.442695, %v448_v47  ;;  %v2019_v27 = vpop.permute.xlu1 %480  ;;  %v1397_v43 = vld [vmem:[%s2536_s0 + $0x48] sm:$0xff] }
 0x203   :  { %1518 = vpow2.f32 %v1391_v42 }
 0x204   :  { %1520 = vpow2.f32 %v1392_v45 }
 0x205   :  { %1522 = vpow2.f32 %v1393_v49 }
 0x206   :  { %1524 = vtanh.f32 %v447_v50  ;;  %v2021_v35 = vpop.permute.xlu1 %489 }
 0x207   :  { %v492_v38 = vmul.f32 %v2021_v35, %v1965_v61  ;;  %v1396_v61 = vld [vmem:[%s2536_s0 + $0x40] sm:$0xff] }
 0x20d   :  { %v1519_v51 = vpop.eup %1518 }
 0x20e   :  { %v1521_v52 = vpop.eup %1520  ;;  %v452_v53 = vadd.f32 1.0, %v1519_v51 }
 0x20f   :  { %v458_v54 = vadd.f32 1.0, %v1521_v52  ;;  %v1523_v55 = vpop.eup %1522 }
 0x210   :  { %1526 = vrcp.f32 %v452_v53  ;;  %v1525_v57 = vpop.eup %1524  ;;  %v465_v60 = vadd.f32 1.0, %v1523_v55 }
 0x211   :  { %1528 = vrcp.f32 %v458_v54 }
 0x212   :  { %1530 = vrcp.f32 %v465_v60 }
 0x21a   :  { %v1527_v58 = vpop.eup %1526 }
 0x21b   :  { %v1529_v59 = vpop.eup %1528  ;;  %v469_v62 = vmul.f32 %v1527_v58, %v1525_v57  ;;  %v1399_v57 = vld [vmem:[%s2536_s0 + $0x58] sm:$0xff] }
 0x21c   :  { %v468_v63 = vmul.f32 %v1529_v59, %v1960_v56  ;;  %v1531_v28 = vpop.eup %1530  ;;  %v1398_v59 = vld [vmem:[%s2536_s0 + $0x50] sm:$0xff] }
 0x21e   :  { %v2016_v25 = vadd.f32 %v469_v62, %v468_v63 }
 0x220   :  { %1532 = vtanh.f32 %v2016_v25 }
 0x22a   :  { %v1533_v32 = vpop.eup %1532 }
 0x22b   :  { %v472_v33 = vmul.f32 %v1533_v32, %v1531_v28 }
 0x22d   :  { %v483_v40 = vmul.f32 %v2019_v27, %v472_v33 }
 0x22f   :  { %1395 = vst [vmem:[%s2537_s3 + $0x8] sm:$0xff] %v483_v40  ;;  %v2029_v41 = vadd.f32 %v492_v38, %v483_v40  ;;  %v494_v38 = vmul.f32 %v2019_v27, %v2016_v25 }
 0x231   :  { %v502_v42 = vpack.c.bf16 %v2029_v41, %v2029_v41 }
 0x233   :  { %536 = vmatmul.mubr.bf16.vlgmr.msra.gmra.mrb[8].mxu0 %v502_v42  ;;  %577 = vmatmul.mubr.bf16.vlgmr.msra.gmra.mrb[8].mxu1 %v502_v42  ;;  %v495_v42 = vmul.f32 %v2021_v35, %v1960_v56  ;;  %v2091_v56 = vpop.permute.xlu1 %629 }
 0x234   :  { %644 = vmatpush1.bf16.msra.mxu0 %v1705_v2  ;;  %685 = vmatpush1.bf16.msra.mxu1 %v1735_v7  ;;  %v632_v35 = vmul.f32 %v2091_v56, %v2029_v41  ;;  %v1405_v41 = vld [vmem:[%s2536_s0 + $0x60] sm:$0xff] }
 0x235   :  { %645 = vmatprep.subr.bf16.mxu0 %v1713_v3  ;;  %686 = vmatprep.subr.bf16.mxu1 %v1754_v10 }
 0x236   :  { %675 = vmatprep.mubr.bf16.mxu0 %v1662_v1  ;;  %716 = vmatprep.mubr.bf16.mxu1 %v1662_v1 }
 0x238   :  { %646 = vmatpush1.bf16.msra.mxu0 %v1719_v4  ;;  %687 = vmatpush1.bf16.msra.mxu1 %v1759_v11 }
 0x239   :  { %647 = vmatprep.subr.bf16.mxu0 %v1725_v5  ;;  %688 = vmatprep.subr.bf16.mxu1 %v1776_v14 }
 0x23c   :  { %648 = vmatpush1.bf16.msra.mxu0 %v1741_v8  ;;  %689 = vmatpush1.bf16.msra.mxu1 %v1783_v15 }
 0x23d   :  { %649 = vmatprep.subr.bf16.mxu0 %v1748_v9  ;;  %690 = vmatprep.subr.bf16.mxu1 %v1789_v16 }
 0x240   :  { %650 = vmatpush1.bf16.msra.mxu0 %v1766_v12  ;;  %691 = vmatpush1.bf16.msra.mxu1 %v1807_v19 }
 0x241   :  { %651 = vmatprep.subr.bf16.mxu0 %v1771_v13  ;;  %692 = vmatprep.subr.bf16.mxu1 %v1813_v20 }
 0x244   :  { %652 = vmatpush1.bf16.msra.mxu0 %v1795_v17  ;;  %693 = vmatpush1.bf16.msra.mxu1 %v1831_v23 }
 0x245   :  { %653 = vmatprep.subr.bf16.mxu0 %v1801_v18  ;;  %694 = vmatprep.subr.bf16.mxu1 %v1837_v24 }
 0x248   :  { %654 = vmatpush1.bf16.msra.mxu0 %v1819_v21  ;;  %695 = vmatpush1.bf16.msra.mxu1 %v1862_v30 }
 0x249   :  { %655 = vmatprep.subr.bf16.mxu0 %v1824_v22  ;;  %696 = vmatprep.subr.bf16.mxu1 %v1868_v31 }
 0x24c   :  { %656 = vmatpush1.bf16.msra.mxu0 %v1849_v26  ;;  %697 = vmatpush1.bf16.msra.mxu1 %v1884_v36 }
 0x24d   :  { %657 = vmatprep.subr.bf16.mxu0 %v1856_v29  ;;  %698 = vmatprep.subr.bf16.mxu1 %v1890_v37 }
 0x250   :  { %658 = vmatpush1.bf16.msra.mxu0 %v1876_v34  ;;  %699 = vmatpush1.bf16.msra.mxu1 %v1899_v39 }
 0x251   :  { %783 = vmatprep.subr.bf16.mxu0 %v1698_v0  ;;  %824 = vmatprep.subr.bf16.mxu1 %v1730_v6 }
 0x306   :  { %v537_v44 = vpop.f32.mrb[8].mxu0  ;;  %v578_v45 = vpop.f32.mrb[8].mxu1 }
 0x307   :  { %v585_v46 = vadd.f32 %v1396_v61, %v537_v44  ;;  %v539_v47 = vpop.f32.mrb[9].mxu0  ;;  %v580_v48 = vpop.f32.mrb[9].mxu1  ;;  %v587_v62 = vadd.f32 %v1398_v59, %v578_v45  ;;  %v2083_v44 = vadd.f32 %v495_v42, %v494_v38  ;;  %v1408_v42 = vld [vmem:[%s2536_s0 + $0x78] sm:$0xff] }
 0x308   :  { %v586_v49 = vadd.f32 %v1397_v43, %v539_v47  ;;  %v541_v50 = vpop.f32.mrb[10].mxu0  ;;  %v582_v51 = vpop.f32.mrb[10].mxu1  ;;  %v588_v58 = vadd.f32 %v1399_v57, %v580_v48 }
 0x309   :  { %v1400_v52 = vmul.f32 -1.442695, %v585_v46  ;;  %v542_v53 = vpop.f32.mrb[11].mxu0  ;;  %v583_v54 = vpop.f32.mrb[11].mxu1 }
 0x30a   :  { %v1401_v55 = vmul.f32 -1.442695, %v586_v49  ;;  %v1402_v60 = vmul.f32 -1.442695, %v588_v58  ;;  %v2089_v51 = vpop.permute.xlu0 %620 }
 0x30b   :  { %1534 = vpow2.f32 %v1400_v52 }
 0x30c   :  { %1536 = vpow2.f32 %v1401_v55  ;;  %v1406_v55 = vld [vmem:[%s2536_s0 + $0x68] sm:$0xff] }
 0x30d   :  { %1538 = vpow2.f32 %v1402_v60 }
 0x30e   :  { %1540 = vtanh.f32 %v587_v62 }
 0x315   :  { %v1535_v63 = vpop.eup %1534 }
 0x316   :  { %v1537_v28 = vpop.eup %1536  ;;  %v592_v32 = vadd.f32 1.0, %v1535_v63 }
 0x317   :  { %v598_v33 = vadd.f32 1.0, %v1537_v28  ;;  %v1539_v40 = vpop.eup %1538 }
 0x318   :  { %1542 = vrcp.f32 %v592_v32  ;;  %v1541_v61 = vpop.eup %1540  ;;  %v605_v47 = vadd.f32 1.0, %v1539_v40 }
 0x319   :  { %1544 = vrcp.f32 %v598_v33 }
 0x31a   :  { %1546 = vrcp.f32 %v605_v47 }
 0x322   :  { %v1543_v43 = vpop.eup %1542 }
 0x323   :  { %v1545_v45 = vpop.eup %1544  ;;  %v609_v46 = vmul.f32 %v1543_v43, %v1541_v61  ;;  %v1407_v43 = vld [vmem:[%s2536_s0 + $0x70] sm:$0xff] }
 0x324   :  { %v608_v48 = vmul.f32 %v1545_v45, %v2083_v44  ;;  %v1547_v50 = vpop.eup %1546 }
 0x326   :  { %v2086_v49 = vadd.f32 %v609_v46, %v608_v48 }
 0x328   :  { %1548 = vtanh.f32 %v2086_v49 }
 0x332   :  { %v1549_v25 = vpop.eup %1548 }
 0x333   :  { %v612_v27 = vmul.f32 %v1549_v25, %v1547_v50 }
 0x335   :  { %v623_v52 = vmul.f32 %v2089_v51, %v612_v27  ;;  %v634_v27 = vmul.f32 %v2089_v51, %v2086_v49 }
 0x337   :  { %1404 = vst [vmem:[%s2537_s3 + $0x10] sm:$0xff] %v623_v52  ;;  %v2099_v53 = vadd.f32 %v632_v35, %v623_v52  ;;  %v635_v52 = vmul.f32 %v2091_v56, %v2083_v44  ;;  %v2161_v44 = vpop.permute.xlu1 %769 }
 0x339   :  { %v642_v54 = vpack.c.bf16 %v2099_v53, %v2099_v53 }
 0x33b   :  { %676 = vmatmul.mubr.bf16.vlgmr.msra.gmra.mrb[12].mxu0 %v642_v54  ;;  %717 = vmatmul.mubr.bf16.vlgmr.msra.gmra.mrb[12].mxu1 %v642_v54 }
 0x33c   :  { %784 = vmatpush1.bf16.msra.mxu0 %v1705_v2  ;;  %825 = vmatpush1.bf16.msra.mxu1 %v1735_v7 }
 0x33d   :  { %785 = vmatprep.subr.bf16.mxu0 %v1713_v3  ;;  %826 = vmatprep.subr.bf16.mxu1 %v1754_v10 }
 0x33e   :  { %815 = vmatprep.mubr.bf16.mxu0 %v1662_v1  ;;  %856 = vmatprep.mubr.bf16.mxu1 %v1662_v1 }
 0x340   :  { %786 = vmatpush1.bf16.msra.mxu0 %v1719_v4  ;;  %827 = vmatpush1.bf16.msra.mxu1 %v1759_v11 }
 0x341   :  { %787 = vmatprep.subr.bf16.mxu0 %v1725_v5  ;;  %828 = vmatprep.subr.bf16.mxu1 %v1776_v14 }
 0x344   :  { %788 = vmatpush1.bf16.msra.mxu0 %v1741_v8  ;;  %829 = vmatpush1.bf16.msra.mxu1 %v1783_v15 }
 0x345   :  { %789 = vmatprep.subr.bf16.mxu0 %v1748_v9  ;;  %830 = vmatprep.subr.bf16.mxu1 %v1789_v16 }
 0x348   :  { %790 = vmatpush1.bf16.msra.mxu0 %v1766_v12  ;;  %831 = vmatpush1.bf16.msra.mxu1 %v1807_v19 }
 0x349   :  { %791 = vmatprep.subr.bf16.mxu0 %v1771_v13  ;;  %832 = vmatprep.subr.bf16.mxu1 %v1813_v20 }
 0x34c   :  { %792 = vmatpush1.bf16.msra.mxu0 %v1795_v17  ;;  %833 = vmatpush1.bf16.msra.mxu1 %v1831_v23 }
 0x34d   :  { %793 = vmatprep.subr.bf16.mxu0 %v1801_v18  ;;  %834 = vmatprep.subr.bf16.mxu1 %v1837_v24 }
 0x350   :  { %794 = vmatpush1.bf16.msra.mxu0 %v1819_v21  ;;  %835 = vmatpush1.bf16.msra.mxu1 %v1862_v30 }
 0x351   :  { %795 = vmatprep.subr.bf16.mxu0 %v1824_v22  ;;  %836 = vmatprep.subr.bf16.mxu1 %v1868_v31 }
 0x354   :  { %796 = vmatpush1.bf16.msra.mxu0 %v1849_v26  ;;  %837 = vmatpush1.bf16.msra.mxu1 %v1884_v36 }
 0x355   :  { %797 = vmatprep.subr.bf16.mxu0 %v1856_v29  ;;  %838 = vmatprep.subr.bf16.mxu1 %v1890_v37 }
 0x358   :  { %798 = vmatpush1.bf16.msra.mxu0 %v1876_v34  ;;  %839 = vmatpush1.bf16.msra.mxu1 %v1899_v39 }
 0x359   :  { %923 = vmatprep.subr.bf16.mxu0 %v1698_v0  ;;  %964 = vmatprep.subr.bf16.mxu1 %v1730_v6 }
 0x40e   :  { %v677_v57 = vpop.f32.mrb[12].mxu0  ;;  %v718_v58 = vpop.f32.mrb[12].mxu1 }
 0x40f   :  { %v725_v59 = vadd.f32 %v1405_v41, %v677_v57  ;;  %v679_v60 = vpop.f32.mrb[13].mxu0  ;;  %v720_v62 = vpop.f32.mrb[13].mxu1  ;;  %v727_v46 = vadd.f32 %v1407_v43, %v718_v58 }
 0x410   :  { %v726_v63 = vadd.f32 %v1406_v55, %v679_v60  ;;  %v681_v28 = vpop.f32.mrb[14].mxu0  ;;  %v722_v32 = vpop.f32.mrb[14].mxu1  ;;  %v728_v61 = vadd.f32 %v1408_v42, %v720_v62  ;;  %v2153_v55 = vadd.f32 %v635_v52, %v634_v27 }
 0x411   :  { %v1409_v33 = vmul.f32 -1.442695, %v725_v59  ;;  %v682_v0 = vpop.f32.mrb[15].mxu0  ;;  %v723_v38 = vpop.f32.mrb[15].mxu1  ;;  %v772_v32 = vmul.f32 %v2161_v44, %v2099_v53 }
 0x412   :  { %v1410_v40 = vmul.f32 -1.442695, %v726_v63  ;;  %v1411_v45 = vmul.f32 -1.442695, %v728_v61  ;;  %v2159_v28 = vpop.permute.xlu0 %760 }
 0x413   :  { %1550 = vpow2.f32 %v1409_v33 }
 0x414   :  { %1552 = vpow2.f32 %v1410_v40 }
 0x415   :  { %1554 = vpow2.f32 %v1411_v45 }
 0x416   :  { %1556 = vtanh.f32 %v727_v46 }
 0x41d   :  { %v1551_v47 = vpop.eup %1550 }
 0x41e   :  { %v1553_v48 = vpop.eup %1552  ;;  %v732_v50 = vadd.f32 1.0, %v1551_v47 }
 0x41f   :  { %v738_v25 = vadd.f32 1.0, %v1553_v48  ;;  %v1555_v35 = vpop.eup %1554 }
 0x420   :  { %1558 = vrcp.f32 %v732_v50  ;;  %v1557_v54 = vpop.eup %1556  ;;  %v745_v59 = vadd.f32 1.0, %v1555_v35  ;;  %v2234_v50 = vpop.permute.xlu0 %900 }
 0x421   :  { %1560 = vrcp.f32 %v738_v25  ;;  %v2236_v25 = vpop.permute.xlu1 %909 }
 0x422   :  { %1562 = vrcp.f32 %v745_v59  ;;  %v2277_v59 = vld [vmem:[%s2534_s1 + $0x20] ss:$16 sps:$4 sm:$0xff]  }
 0x42a   :  { %v1559_v41 = vpop.eup %1558 }
 0x42b   :  { %v1561_v57 = vpop.eup %1560  ;;  %v749_v58 = vmul.f32 %v1559_v41, %v1557_v54  ;;  %v2251_v41 = vld [vmem:[%s2534_s1] ss:$16 sps:$4 sm:$0xff]  }
 0x42c   :  { %v748_v60 = vmul.f32 %v1561_v57, %v2153_v55  ;;  %v1563_v63 = vpop.eup %1562  ;;  %v2263_v57 = vld [vmem:[%s2534_s1 + $0x24] ss:$16 sps:$4 sm:$0xff]  }
 0x42e   :  { %v2156_v62 = vadd.f32 %v749_v58, %v748_v60  ;;  %v2269_v58 = vld [vmem:[%s2534_s1 + $0x2c] ss:$16 sps:$4 sm:$0xff]   ;;  %v2283_v60 = vld [vmem:[%s2534_s1 + $0x28] ss:$16 sps:$4 sm:$0xff]  }
 0x430   :  { %1564 = vtanh.f32 %v2156_v62 }
 0x43a   :  { %v1565_v49 = vpop.eup %1564 }
 0x43b   :  { %v752_v51 = vmul.f32 %v1565_v49, %v1563_v63  ;;  %v2295_v63 = vld [vmem:[%s2534_s1 + $0x4c] ss:$16 sps:$4 sm:$0xff]   ;;  %v2301_v49 = vld [vmem:[%s2534_s1 + $0x40] ss:$16 sps:$4 sm:$0xff]  }
 0x43d   :  { %v763_v56 = vmul.f32 %v2159_v28, %v752_v51  ;;  %v2307_v51 = vld [vmem:[%s2534_s1 + $0x48] ss:$16 sps:$4 sm:$0xff]  }
 0x43f   :  { %1413 = vst [vmem:[%s2537_s3 + $0x18] sm:$0xff] %v763_v56  ;;  %v2169_v33 = vadd.f32 %v772_v32, %v763_v56  ;;  %v2325_v56 = vld [vmem:[%s2534_s1 + $0x60] ss:$16 sps:$4 sm:$0xff]   ;;  %v2331_v32 = vld [vmem:[%s2534_s1 + $0x68] ss:$16 sps:$4 sm:$0xff]  }
 0x441   :  { %v782_v0 = vpack.c.bf16 %v2169_v33, %v2169_v33  ;;  %v912_v35 = vmul.f32 %v2236_v25, %v2169_v33  ;;  %v2337_v33 = vld [vmem:[%s2534_s1 + $0x84] ss:$16 sps:$4 sm:$0xff]  }
 0x443   :  { %816 = vmatmul.mubr.bf16.vlgmr.msra.gmra.mrb[16].mxu0 %v782_v0  ;;  %857 = vmatmul.mubr.bf16.vlgmr.msra.gmra.mrb[16].mxu1 %v782_v0  ;;  %v2343_v0 = vld [vmem:[%s2534_s1 + $0x8c] ss:$16 sps:$4 sm:$0xff]  }
 0x444   :  { %924 = vmatpush1.bf16.msra.mxu0 %v1705_v2  ;;  %965 = vmatpush1.bf16.msra.mxu1 %v1735_v7  ;;  %v2208_v2 = vld [vmem:[%s2534_s1 + $0x4] ss:$16 sps:$4 sm:$0xff]  }
 0x445   :  { %925 = vmatprep.subr.bf16.mxu0 %v1713_v3  ;;  %966 = vmatprep.subr.bf16.mxu1 %v1754_v10  ;;  %v1414_v3 = vld [vmem:[%s2536_s0 + $0x80] sm:$0xff] }
 0x446   :  { %955 = vmatprep.mubr.bf16.mxu0 %v1662_v1  ;;  %996 = vmatprep.mubr.bf16.mxu1 %v1662_v1 }
 0x448   :  { %926 = vmatpush1.bf16.msra.mxu0 %v1719_v4  ;;  %967 = vmatpush1.bf16.msra.mxu1 %v1759_v11  ;;  %v1415_v4 = vld [vmem:[%s2536_s0 + $0x88] sm:$0xff] }
 0x449   :  { %927 = vmatprep.subr.bf16.mxu0 %v1725_v5  ;;  %968 = vmatprep.subr.bf16.mxu1 %v1776_v14 }
 0x44c   :  { %928 = vmatpush1.bf16.msra.mxu0 %v1741_v8  ;;  %969 = vmatpush1.bf16.msra.mxu1 %v1783_v15 }
 0x44d   :  { %929 = vmatprep.subr.bf16.mxu0 %v1748_v9  ;;  %970 = vmatprep.subr.bf16.mxu1 %v1789_v16 }
 0x450   :  { %930 = vmatpush1.bf16.msra.mxu0 %v1766_v12  ;;  %971 = vmatpush1.bf16.msra.mxu1 %v1807_v19  ;;  %v1416_v19 = vld [vmem:[%s2536_s0 + $0x90] sm:$0xff] }
 0x451   :  { %931 = vmatprep.subr.bf16.mxu0 %v1771_v13  ;;  %972 = vmatprep.subr.bf16.mxu1 %v1813_v20 }
 0x454   :  { %932 = vmatpush1.bf16.msra.mxu0 %v1795_v17  ;;  %973 = vmatpush1.bf16.msra.mxu1 %v1831_v23  ;;  %v1417_v17 = vld [vmem:[%s2536_s0 + $0x98] sm:$0xff] }
 0x455   :  { %933 = vmatprep.subr.bf16.mxu0 %v1801_v18  ;;  %974 = vmatprep.subr.bf16.mxu1 %v1837_v24 }
 0x458   :  { %934 = vmatpush1.bf16.msra.mxu0 %v1819_v21  ;;  %975 = vmatpush1.bf16.msra.mxu1 %v1862_v30 }
 0x459   :  { %935 = vmatprep.subr.bf16.mxu0 %v1824_v22  ;;  %976 = vmatprep.subr.bf16.mxu1 %v1868_v31  ;;  %v775_v31 = vmul.f32 %v2161_v44, %v2153_v55  ;;  %v2257_v55 = vld [vmem:[%s2534_s1 + $0x8] ss:$16 sps:$4 sm:$0xff]   ;;  %v2319_v44 = vld [vmem:[%s2534_s1 + $0x6c] ss:$16 sps:$4 sm:$0xff]  }
 0x45c   :  { %936 = vmatpush1.bf16.msra.mxu0 %v1849_v26  ;;  %977 = vmatpush1.bf16.msra.mxu1 %v1884_v36 }
 0x45d   :  { %937 = vmatprep.subr.bf16.mxu0 %v1856_v29  ;;  %978 = vmatprep.subr.bf16.mxu1 %v1890_v37  ;;  %v774_v29 = vmul.f32 %v2159_v28, %v2156_v62  ;;  %v2289_v62 = vld [vmem:[%s2534_s1 + $0x44] ss:$16 sps:$4 sm:$0xff]  }
 0x45e   :  { %v2313_v28 = vld [vmem:[%s2534_s1 + $0x64] ss:$16 sps:$4 sm:$0xff]  }
 0x45f   :  { %v2228_v38 = vadd.f32 %v775_v31, %v774_v29 }
 0x460   :  { %938 = vmatpush1.bf16.msra.mxu0 %v1876_v34  ;;  %979 = vmatpush1.bf16.msra.mxu1 %v1899_v39 }
 0x461   :  { %1063 = vmatprep.subr.bf16.mxu0 %v2208_v2  ;;  %1104 = vmatprep.subr.bf16.mxu1 %v1730_v6 }
 0x516   :  { %v817_v5 = vpop.f32.mrb[16].mxu0  ;;  %v858_v7 = vpop.f32.mrb[16].mxu1 }
 0x517   :  { %v865_v8 = vadd.f32 %v1414_v3, %v817_v5  ;;  %v819_v9 = vpop.f32.mrb[17].mxu0  ;;  %v860_v10 = vpop.f32.mrb[17].mxu1  ;;  %v867_v21 = vadd.f32 %v1416_v19, %v858_v7  ;;  %v2349_v3 = vld [vmem:[%s2534_s1 + $0x80] ss:$16 sps:$4 sm:$0xff]   ;;  %v2361_v5 = vld [vmem:[%s2534_s1 + $0xa4] ss:$16 sps:$4 sm:$0xff]  }
 0x518   :  { %v866_v11 = vadd.f32 %v1415_v4, %v819_v9  ;;  %v821_v12 = vpop.f32.mrb[18].mxu0  ;;  %v862_v13 = vpop.f32.mrb[18].mxu1  ;;  %v868_v18 = vadd.f32 %v1417_v17, %v860_v10  ;;  %v2355_v4 = vld [vmem:[%s2534_s1 + $0x88] ss:$16 sps:$4 sm:$0xff]   ;;  %v2367_v7 = vld [vmem:[%s2534_s1 + $0xac] ss:$16 sps:$4 sm:$0xff]  }
 0x519   :  { %v1418_v14 = vmul.f32 -1.442695, %v865_v8  ;;  %v822_v15 = vpop.f32.mrb[19].mxu0  ;;  %v863_v16 = vpop.f32.mrb[19].mxu1  ;;  %v2373_v8 = vld [vmem:[%s2534_s1 + $0xa0] ss:$16 sps:$4 sm:$0xff]  }
 0x51a   :  { %v1419_v6 = vmul.f32 -1.442695, %v866_v11  ;;  %v1420_v20 = vmul.f32 -1.442695, %v868_v18  ;;  %v2379_v9 = vld [vmem:[%s2534_s1 + $0xa8] ss:$16 sps:$4 sm:$0xff]  }
 0x51b   :  { %1566 = vpow2.f32 %v1418_v14  ;;  %v2385_v10 = vld [vmem:[%s2534_s1 + $0xc4] ss:$16 sps:$4 sm:$0xff]   ;;  %v2391_v11 = vld [vmem:[%s2534_s1 + $0xcc] ss:$16 sps:$4 sm:$0xff]   ;;  %v2397_v12 = vld [vmem:[%s2534_s1 + $0xc0] ss:$16 sps:$4 sm:$0xff]  }
 0x51c   :  { %1568 = vpow2.f32 %v1419_v6  ;;  %v2404_v13 = vld [vmem:[%s2534_s1 + $0xe4] ss:$16 sps:$4 sm:$0xff]   ;;  %v2411_v14 = vld [vmem:[%s2534_s1 + $0xe0] ss:$16 sps:$4 sm:$0xff]   ;;  %v1424_v15 = vld [vmem:[%s2536_s0 + $0xa8] sm:$0xff] }
 0x51d   :  { %1570 = vpow2.f32 %v1420_v20 }
 0x51e   :  { %1572 = vtanh.f32 %v867_v21 }
 0x525   :  { %v1567_v22 = vpop.eup %1566 }
 0x526   :  { %v1569_v23 = vpop.eup %1568  ;;  %v872_v24 = vadd.f32 1.0, %v1567_v22 }
 0x527   :  { %v878_v26 = vadd.f32 1.0, %v1569_v23  ;;  %v1571_v30 = vpop.eup %1570 }
 0x528   :  { %1574 = vrcp.f32 %v872_v24  ;;  %v1573_v34 = vpop.eup %1572  ;;  %v885_v61 = vadd.f32 1.0, %v1571_v30  ;;  %v1425_v30 = vld [vmem:[%s2536_s0 + $0xb0] sm:$0xff] }
 0x529   :  { %1576 = vrcp.f32 %v878_v26  ;;  %v1426_v26 = vld [vmem:[%s2536_s0 + $0xb8] sm:$0xff] }
 0x52a   :  { %1578 = vrcp.f32 %v885_v61 }
 0x532   :  { %v1575_v53 = vpop.eup %1574 }
 0x533   :  { %v1577_v40 = vpop.eup %1576  ;;  %v889_v42 = vmul.f32 %v1575_v53, %v1573_v34 }
 0x534   :  { %v888_v43 = vmul.f32 %v1577_v40, %v2228_v38  ;;  %v1579_v46 = vpop.eup %1578 }
 0x536   :  { %v2231_v45 = vadd.f32 %v889_v42, %v888_v43 }
 0x538   :  { %1580 = vtanh.f32 %v2231_v45  ;;  %v914_v43 = vmul.f32 %v2234_v50, %v2231_v45 }
 0x542   :  { %v1581_v47 = vpop.eup %1580 }
 0x543   :  { %v892_v48 = vmul.f32 %v1581_v47, %v1579_v46  ;;  %v915_v47 = vmul.f32 %v2236_v25, %v2228_v38  ;;  %v2443_v38 = vpop.permute.xlu1 %1049 }
 0x545   :  { %v903_v27 = vmul.f32 %v2234_v50, %v892_v48 }
 0x547   :  { %1422 = vst [vmem:[%s2537_s3 + $0x20] sm:$0xff] %v903_v27  ;;  %v2244_v52 = vadd.f32 %v912_v35, %v903_v27  ;;  %v2435_v35 = vadd.f32 %v915_v47, %v914_v43  ;;  %v1441_v47 = vld [vmem:[%s2536_s0 + $0xe0] sm:$0xff] }
 0x549   :  { %v922_v54 = vpack.c.bf16 %v2244_v52, %v2244_v52 }
 0x54b   :  { %956 = vmatmul.mubr.bf16.vlgmr.msra.gmra.mrb[20].mxu0 %v922_v54  ;;  %997 = vmatmul.mubr.bf16.vlgmr.msra.gmra.mrb[20].mxu1 %v922_v54 }
 0x54c   :  { %1064 = vmatpush1.bf16.msra.mxu0 %v2251_v41  ;;  %1105 = vmatpush1.bf16.msra.mxu1 %v2257_v55 }
 0x54d   :  { %1065 = vmatprep.subr.bf16.mxu0 %v2263_v57  ;;  %1106 = vmatprep.subr.bf16.mxu1 %v2269_v58 }
 0x54e   :  { %1095 = vmatprep.mubr.bf16.mxu0 %v1662_v1  ;;  %1136 = vmatprep.mubr.bf16.mxu1 %v1662_v1 }
 0x550   :  { %1066 = vmatpush1.bf16.msra.mxu0 %v2277_v59  ;;  %1107 = vmatpush1.bf16.msra.mxu1 %v2283_v60 }
 0x551   :  { %1067 = vmatprep.subr.bf16.mxu0 %v2289_v62  ;;  %1108 = vmatprep.subr.bf16.mxu1 %v2295_v63 }
 0x554   :  { %1068 = vmatpush1.bf16.msra.mxu0 %v2301_v49  ;;  %1109 = vmatpush1.bf16.msra.mxu1 %v2307_v51 }
 0x555   :  { %1069 = vmatprep.subr.bf16.mxu0 %v2313_v28  ;;  %1110 = vmatprep.subr.bf16.mxu1 %v2319_v44 }
 0x558   :  { %1070 = vmatpush1.bf16.msra.mxu0 %v2325_v56  ;;  %1111 = vmatpush1.bf16.msra.mxu1 %v2331_v32 }
 0x559   :  { %1071 = vmatprep.subr.bf16.mxu0 %v2337_v33  ;;  %1112 = vmatprep.subr.bf16.mxu1 %v2343_v0 }
 0x55c   :  { %1072 = vmatpush1.bf16.msra.mxu0 %v2349_v3  ;;  %1113 = vmatpush1.bf16.msra.mxu1 %v2355_v4 }
 0x55d   :  { %1073 = vmatprep.subr.bf16.mxu0 %v2361_v5  ;;  %1114 = vmatprep.subr.bf16.mxu1 %v2367_v7 }
 0x560   :  { %1074 = vmatpush1.bf16.msra.mxu0 %v2373_v8  ;;  %1115 = vmatpush1.bf16.msra.mxu1 %v2379_v9 }
 0x561   :  { %1075 = vmatprep.subr.bf16.mxu0 %v2385_v10  ;;  %1116 = vmatprep.subr.bf16.mxu1 %v2391_v11 }
 0x564   :  { %1076 = vmatpush1.bf16.msra.mxu0 %v2397_v12  ;;  %1117 = vmatpush1.bf16.msra.mxu1 %v1884_v36  ;;  %v1658_v36 = vld [vmem:[%s2534_s1 + $0xc] ss:$16 sps:$4 sm:$0xff]  }
 0x565   :  { %1077 = vmatprep.subr.bf16.mxu0 %v2404_v13  ;;  %1118 = vmatprep.subr.bf16.mxu1 %v1890_v37  ;;  %v1423_v37 = vld [vmem:[%s2536_s0 + $0xa0] sm:$0xff] }
 0x568   :  { %1078 = vmatpush1.bf16.msra.mxu0 %v2411_v14  ;;  %1119 = vmatpush1.bf16.msra.mxu1 %v1899_v39 }
 0x569   :  { %1203 = vmatprep.subr.bf16.mxu0 %v2208_v2  ;;  %1244 = vmatprep.subr.bf16.mxu1 %v1658_v36 }
 0x61e   :  { %v957_v16 = vpop.f32.mrb[20].mxu0  ;;  %v998_v6 = vpop.f32.mrb[20].mxu1 }
 0x61f   :  { %v1005_v17 = vadd.f32 %v1423_v37, %v957_v16  ;;  %v959_v18 = vpop.f32.mrb[21].mxu0  ;;  %v1000_v39 = vpop.f32.mrb[21].mxu1  ;;  %v1007_v34 = vadd.f32 %v1425_v30, %v998_v6 }
 0x620   :  { %v1006_v19 = vadd.f32 %v1424_v15, %v959_v18  ;;  %v961_v2 = vpop.f32.mrb[22].mxu0  ;;  %v1002_v20 = vpop.f32.mrb[22].mxu1  ;;  %v1008_v29 = vadd.f32 %v1426_v26, %v1000_v39  ;;  %v1052_v18 = vmul.f32 %v2443_v38, %v2244_v52  ;;  %v1660_v52 = vld [vmem:[%s2534_s1 + $0xec] ss:$16 sps:$4 sm:$0xff]  }
 0x621   :  { %v1427_v21 = vmul.f32 -1.442695, %v1005_v17  ;;  %v962_v22 = vpop.f32.mrb[23].mxu0  ;;  %v1003_v23 = vpop.f32.mrb[23].mxu1 }
 0x622   :  { %v1428_v24 = vmul.f32 -1.442695, %v1006_v19  ;;  %v1429_v31 = vmul.f32 -1.442695, %v1008_v29  ;;  %v2441_v17 = vpop.permute.xlu0 %1040 }
 0x623   :  { %1582 = vpow2.f32 %v1427_v21 }
 0x624   :  { %1584 = vpow2.f32 %v1428_v24 }
 0x625   :  { %1586 = vpow2.f32 %v1429_v31 }
 0x626   :  { %1588 = vtanh.f32 %v1007_v34 }
 0x62d   :  { %v1583_v53 = vpop.eup %1582 }
 0x62e   :  { %v1585_v40 = vpop.eup %1584  ;;  %v1012_v42 = vadd.f32 1.0, %v1583_v53  ;;  %v1181_v53 = vpop.permute.xlu0 %1180 }
 0x62f   :  { %v1018_v61 = vadd.f32 1.0, %v1585_v40  ;;  %v1587_v46 = vpop.eup %1586  ;;  %v1190_v40 = vpop.permute.xlu1 %1189 }
 0x630   :  { %1590 = vrcp.f32 %v1012_v42  ;;  %v1589_v48 = vpop.eup %1588  ;;  %v1025_v37 = vadd.f32 1.0, %v1587_v46 }
 0x631   :  { %1592 = vrcp.f32 %v1018_v61 }
 0x632   :  { %1594 = vrcp.f32 %v1025_v37 }
 0x63a   :  { %v1591_v27 = vpop.eup %1590 }
 0x63b   :  { %v1593_v54 = vpop.eup %1592  ;;  %v1029_v36 = vmul.f32 %v1591_v27, %v1589_v48  ;;  %v1442_v48 = vld [vmem:[%s2536_s0 + $0xe8] sm:$0xff] }
 0x63c   :  { %v1028_v15 = vmul.f32 %v1593_v54, %v2435_v35  ;;  %v1595_v6 = vpop.eup %1594 }
 0x63e   :  { %v2438_v16 = vadd.f32 %v1029_v36, %v1028_v15 }
 0x640   :  { %1596 = vtanh.f32 %v2438_v16 }
 0x64a   :  { %v1597_v45 = vpop.eup %1596 }
 0x64b   :  { %v1032_v50 = vmul.f32 %v1597_v45, %v1595_v6 }
 0x64d   :  { %v1043_v25 = vmul.f32 %v2441_v17, %v1032_v50 }
 0x64f   :  { %1431 = vst [vmem:[%s2537_s3 + $0x28] sm:$0xff] %v1043_v25  ;;  %v2451_v39 = vadd.f32 %v1052_v18, %v1043_v25  ;;  %v1444_v25 = vld [vmem:[%s2536_s0 + $0xf8] sm:$0xff] }
 0x651   :  { %v1062_v19 = vpack.c.bf16 %v2451_v39, %v2451_v39  ;;  %v1192_v61 = vmul.f32 %v1190_v40, %v2451_v39  ;;  %v1443_v39 = vld [vmem:[%s2536_s0 + $0xf0] sm:$0xff] }
 0x653   :  { %1096 = vmatmul.mubr.bf16.vlgmr.msra.gmra.mrb[24].mxu0 %v1062_v19  ;;  %1137 = vmatmul.mubr.bf16.vlgmr.msra.gmra.mrb[24].mxu1 %v1062_v19 }
 0x654   :  { %1204 = vmatpush1.bf16.msra.mxu0 %v2251_v41  ;;  %1245 = vmatpush1.bf16.msra.mxu1 %v2257_v55  ;;  %v1661_v41 = vld [vmem:[%s2534_s1 + $0xe8] ss:$16 sps:$4 sm:$0xff]   ;;  %v1432_v55 = vld [vmem:[%s2536_s0 + $0xc0] sm:$0xff] }
 0x655   :  { %1205 = vmatprep.subr.bf16.mxu0 %v2263_v57  ;;  %1246 = vmatprep.subr.bf16.mxu1 %v2269_v58  ;;  %v1433_v57 = vld [vmem:[%s2536_s0 + $0xc8] sm:$0xff] }
 0x656   :  { %1235 = vmatprep.mubr.bf16.mxu0 %v1662_v1  ;;  %1276 = vmatprep.mubr.bf16.mxu1 %v1662_v1  ;;  %v1659_v1 = vld [vmem:[%s2534_s1 + $0xc8] ss:$16 sps:$4 sm:$0xff]  }
 0x658   :  { %1206 = vmatpush1.bf16.msra.mxu0 %v2277_v59  ;;  %1247 = vmatpush1.bf16.msra.mxu1 %v2283_v60 }
 0x659   :  { %1207 = vmatprep.subr.bf16.mxu0 %v2289_v62  ;;  %1248 = vmatprep.subr.bf16.mxu1 %v2295_v63 }
 0x65c   :  { %1208 = vmatpush1.bf16.msra.mxu0 %v2301_v49  ;;  %1249 = vmatpush1.bf16.msra.mxu1 %v2307_v51 }
 0x65d   :  { %1209 = vmatprep.subr.bf16.mxu0 %v2313_v28  ;;  %1250 = vmatprep.subr.bf16.mxu1 %v2319_v44 }
 0x660   :  { %1210 = vmatpush1.bf16.msra.mxu0 %v2325_v56  ;;  %1251 = vmatpush1.bf16.msra.mxu1 %v2331_v32 }
 0x661   :  { %1211 = vmatprep.subr.bf16.mxu0 %v2337_v33  ;;  %1252 = vmatprep.subr.bf16.mxu1 %v2343_v0  ;;  %v1435_v0 = vld [vmem:[%s2536_s0 + $0xd8] sm:$0xff] }
 0x664   :  { %1212 = vmatpush1.bf16.msra.mxu0 %v2349_v3  ;;  %1253 = vmatpush1.bf16.msra.mxu1 %v2355_v4  ;;  %v1434_v4 = vld [vmem:[%s2536_s0 + $0xd0] sm:$0xff] }
 0x665   :  { %1213 = vmatprep.subr.bf16.mxu0 %v2361_v5  ;;  %1254 = vmatprep.subr.bf16.mxu1 %v2367_v7 }
 0x668   :  { %1214 = vmatpush1.bf16.msra.mxu0 %v2373_v8  ;;  %1255 = vmatpush1.bf16.msra.mxu1 %v2379_v9 }
 0x669   :  { %1215 = vmatprep.subr.bf16.mxu0 %v2385_v10  ;;  %1256 = vmatprep.subr.bf16.mxu1 %v2391_v11 }
 0x66c   :  { %1216 = vmatpush1.bf16.msra.mxu0 %v2397_v12  ;;  %1257 = vmatpush1.bf16.msra.mxu1 %v1659_v1  ;;  %v1054_v12 = vmul.f32 %v2441_v17, %v2438_v16 }
 0x66d   :  { %1217 = vmatprep.subr.bf16.mxu0 %v2404_v13  ;;  %1258 = vmatprep.subr.bf16.mxu1 %v1660_v52 }
 0x670   :  { %1218 = vmatpush1.bf16.msra.mxu0 %v2411_v14  ;;  %1259 = vmatpush1.bf16.msra.mxu1 %v1661_v41  ;;  %v1055_v14 = vmul.f32 %v2443_v38, %v2435_v35 }
 0x672   :  { %v1056_v21 = vadd.f32 %v1055_v14, %v1054_v12 }
 0x726   :  { %v1097_v58 = vpop.f32.mrb[24].mxu0  ;;  %v1138_v59 = vpop.f32.mrb[24].mxu1 }
 0x727   :  { %v1145_v60 = vadd.f32 %v1432_v55, %v1097_v58  ;;  %v1099_v62 = vpop.f32.mrb[25].mxu0  ;;  %v1140_v63 = vpop.f32.mrb[25].mxu1  ;;  %v1147_v7 = vadd.f32 %v1434_v4, %v1138_v59 }
 0x728   :  { %v1146_v49 = vadd.f32 %v1433_v57, %v1099_v62  ;;  %v1101_v51 = vpop.f32.mrb[26].mxu0  ;;  %v1142_v28 = vpop.f32.mrb[26].mxu1  ;;  %v1148_v3 = vadd.f32 %v1435_v0, %v1140_v63 }
 0x729   :  { %v1436_v44 = vmul.f32 -1.442695, %v1145_v60  ;;  %v1102_v56 = vpop.f32.mrb[27].mxu0  ;;  %v1143_v32 = vpop.f32.mrb[27].mxu1  ;;  %v1195_v60 = vmul.f32 %v1190_v40, %v1056_v21 }
 0x72a   :  { %v1437_v33 = vmul.f32 -1.442695, %v1146_v49  ;;  %v1438_v5 = vmul.f32 -1.442695, %v1148_v3  ;;  %v1330_v0 = vpop.permute.xlu1 %1329 }
 0x72b   :  { %1598 = vpow2.f32 %v1436_v44 }
 0x72c   :  { %1600 = vpow2.f32 %v1437_v33  ;;  %v1321_v33 = vpop.permute.xlu0 %1320 }
 0x72d   :  { %1602 = vpow2.f32 %v1438_v5 }
 0x72e   :  { %1604 = vtanh.f32 %v1147_v7 }
 0x735   :  { %v1599_v8 = vpop.eup %1598 }
 0x736   :  { %v1601_v9 = vpop.eup %1600  ;;  %v1152_v10 = vadd.f32 1.0, %v1599_v8 }
 0x737   :  { %v1158_v11 = vadd.f32 1.0, %v1601_v9  ;;  %v1603_v13 = vpop.eup %1602 }
 0x738   :  { %1606 = vrcp.f32 %v1152_v10  ;;  %v1605_v2 = vpop.eup %1604  ;;  %v1165_v24 = vadd.f32 1.0, %v1603_v13 }
 0x739   :  { %1608 = vrcp.f32 %v1158_v11 }
 0x73a   :  { %1610 = vrcp.f32 %v1165_v24 }
 0x742   :  { %v1607_v20 = vpop.eup %1606 }
 0x743   :  { %v1609_v22 = vpop.eup %1608  ;;  %v1169_v23 = vmul.f32 %v1607_v20, %v1605_v2 }
 0x744   :  { %v1168_v26 = vmul.f32 %v1609_v22, %v1056_v21  ;;  %v1611_v30 = vpop.eup %1610 }
 0x746   :  { %v1170_v29 = vadd.f32 %v1169_v23, %v1168_v26 }
 0x748   :  { %1612 = vtanh.f32 %v1170_v29  ;;  %v1194_v58 = vmul.f32 %v1181_v53, %v1170_v29 }
 0x74a   :  { %v1196_v49 = vadd.f32 %v1195_v60, %v1194_v58 }
 0x74c   :  { %v1335_v4 = vmul.f32 %v1330_v0, %v1196_v49 }
 0x752   :  { %v1613_v31 = vpop.eup %1612 }
 0x753   :  { %v1172_v34 = vmul.f32 %v1613_v31, %v1611_v30 }
 0x755   :  { %v1183_v42 = vmul.f32 %v1181_v53, %v1172_v34 }
 0x757   :  { %1440 = vst [vmem:[%s2537_s3 + $0x30] sm:$0xff] %v1183_v42  ;;  %v1193_v43 = vadd.f32 %v1192_v61, %v1183_v42 }
 0x759   :  { %v1202_v46 = vpack.c.bf16 %v1193_v43, %v1193_v43  ;;  %v1332_v10 = vmul.f32 %v1330_v0, %v1193_v43 }
 0x75b   :  { %1236 = vmatmul.mubr.bf16.vlgmr.msra.gmra.mrb[28].mxu0 %v1202_v46  ;;  %1277 = vmatmul.mubr.bf16.vlgmr.msra.gmra.mrb[28].mxu1 %v1202_v46 }
 0x82e   :  { %v1237_v27 = vpop.f32.mrb[28].mxu0  ;;  %v1278_v35 = vpop.f32.mrb[28].mxu1 }
 0x82f   :  { %v1285_v54 = vadd.f32 %v1441_v47, %v1237_v27  ;;  %v1239_v36 = vpop.f32.mrb[29].mxu0  ;;  %v1280_v37 = vpop.f32.mrb[29].mxu1  ;;  %v1287_v1 = vadd.f32 %v1443_v39, %v1278_v35 }
 0x830   :  { %v1286_v15 = vadd.f32 %v1442_v48, %v1239_v36  ;;  %v1241_v16 = vpop.f32.mrb[30].mxu0  ;;  %v1282_v6 = vpop.f32.mrb[30].mxu1  ;;  %v1288_v18 = vadd.f32 %v1444_v25, %v1280_v37 }
 0x831   :  { %v1445_v45 = vmul.f32 -1.442695, %v1285_v54  ;;  %v1242_v50 = vpop.f32.mrb[31].mxu0  ;;  %v1283_v17 = vpop.f32.mrb[31].mxu1 }
 0x832   :  { %v1446_v38 = vmul.f32 -1.442695, %v1286_v15  ;;  %v1447_v19 = vmul.f32 -1.442695, %v1288_v18 }
 0x833   :  { %1614 = vpow2.f32 %v1445_v45 }
 0x834   :  { %1616 = vpow2.f32 %v1446_v38 }
 0x835   :  { %1618 = vpow2.f32 %v1447_v19 }
 0x836   :  { %1620 = vtanh.f32 %v1287_v1 }
 0x83d   :  { %v1615_v52 = vpop.eup %1614 }
 0x83e   :  { %v1617_v41 = vpop.eup %1616  ;;  %v1292_v55 = vadd.f32 1.0, %v1615_v52 }
 0x83f   :  { %v1298_v57 = vadd.f32 1.0, %v1617_v41  ;;  %v1619_v59 = vpop.eup %1618 }
 0x840   :  { %1622 = vrcp.f32 %v1292_v55  ;;  %v1621_v62 = vpop.eup %1620  ;;  %v1305_v44 = vadd.f32 1.0, %v1619_v59 }
 0x841   :  { %1624 = vrcp.f32 %v1298_v57 }
 0x842   :  { %1626 = vrcp.f32 %v1305_v44 }
 0x84a   :  { %v1623_v63 = vpop.eup %1622 }
 0x84b   :  { %v1625_v51 = vpop.eup %1624  ;;  %v1309_v28 = vmul.f32 %v1623_v63, %v1621_v62 }
 0x84c   :  { %v1308_v56 = vmul.f32 %v1625_v51, %v1196_v49  ;;  %v1627_v7 = vpop.eup %1626 }
 0x84e   :  { %v1310_v32 = vadd.f32 %v1309_v28, %v1308_v56 }
 0x850   :  { %1628 = vtanh.f32 %v1310_v32  ;;  %v1334_v3 = vmul.f32 %v1321_v33, %v1310_v32 }
 0x852   :  { %v1336_v5 = vadd.f32 %v1335_v4, %v1334_v3 }
 0x854   :  { %1338 = vst [vmem:[%s2538_s5] sm:$0xff] %v1336_v5 }
 0x85a   :  { %v1629_v8 = vpop.eup %1628 }
 0x85b   :  { %v1312_v9 = vmul.f32 %v1629_v8, %v1627_v7 }
 0x85d   :  { %v1323_v11 = vmul.f32 %v1321_v33, %v1312_v9 }
 0x85f   :  { %1449 = vst [vmem:[%s2537_s3 + $0x38] sm:$0xff] %v1323_v11  ;;  %v1333_v12 = vadd.f32 %v1332_v10, %v1323_v11 }
 0x861   :  { %1337 = vst [vmem:[%s2539_s4] sm:$0xff] %v1333_v12 }

</bundles_post_ra>
